<compile_context>
chip_gen: v7x
topology: tpu7x:2x2x1
jax: 0.10.0
libtpu: 0.0.40
codegen_flags: <defaults>
</compile_context>

<pallas_src>
import jax
import jax.numpy as jnp
from jax import lax
from jax.experimental import pallas as pl
from jax.experimental.pallas import tpu as pltpu

STATE_DIM = 9
ACTION_DIM = 9
RESULT_DIM = 3
INPUT_DIM = STATE_DIM + ACTION_DIM        # 18
HIDDEN_DIM = 10 * INPUT_DIM               # 180
OUTPUT_DIM = STATE_DIM + RESULT_DIM       # 12
PAD_DIM = 128                             # lane-dense width for the second Linear


def _ttt_proxy_kernel(state0_ref, act_bias_ref, w1s_ref, w2_ref, b2_ref, out_ref):
    # state0_ref  : (B, 128)    lanes [3:12) hold state0, rest zero
    # act_bias_ref: (L, B, 180) pre-gathered W1a^T[action] + b1 per step
    # w1s_ref     : (128, 180)  rows [3:12) = state part of W1^T, rest zero
    # w2_ref      : (180, 128)  cols [0:3) = logit cols, [3:12) = state cols, rest 0
    # b2_ref      : (1, 128)
    # out_ref     : (L, B, 128) lanes [0:3) = softmax result, rest ~0
    L, B, _ = out_ref.shape

    # Loop-invariant loads / broadcasts hoisted out of the rollout.
    w1s = w1s_ref[...]                                    # (128, 180)
    w2 = w2_ref[...]                                      # (180, 128)
    b2 = b2_ref[...]                                      # (1, 128)
    lane = lax.broadcasted_iota(jnp.int32, (B, PAD_DIM), 1)
    logit_mask = lane < RESULT_DIM                        # lanes 0..2 are logits

    carry = state0_ref[...]                               # (B, 128) recurrent state in vregs

    # L is static (<= 9): fully unrolled so the scheduler can overlap step t's
    # softmax/store with step t+1's matmuls (only `carry` is on the recurrence).
    for t in range(L):
        # First Linear + ReLU. One-hot action matmul folded into act_bias.
        # TODO(synk): nn.Dropout(0.5) is identity in eval mode; training-mode
        # stochastic dropout (prng mask + 2x scale) is not implemented here.
        h = jnp.maximum(
            jnp.dot(carry, w1s, preferred_element_type=jnp.float32)
            + act_bias_ref[t],
            0.0)                                           # (B, 180)
        # Second Linear into the lane-aligned 128-wide layout.
        y = jnp.dot(h, w2, preferred_element_type=jnp.float32) + b2   # (B, 128)

        # Softmax over the 3 logit lanes (other lanes masked to -1e30 -> exp == 0).
        logits = jnp.where(logit_mask, y, -1e30)
        m = jnp.max(logits, axis=-1, keepdims=True)
        e = jnp.exp(logits - m)
        denom = jnp.sum(e, axis=-1, keepdims=True)
        out_ref[t] = e * pl.reciprocal(denom, approx=True)  # unmasked 128-lane store

        # Next state: ReLU on the full 128-wide y is exact because w1s rows
        # outside the state lanes are zero (logit/pad lanes contribute nothing
        # to the next step's first matmul).
        carry = jnp.maximum(y, 0.0)


def init_params(key):
    """Deterministic PyTorch-Linear-style init (uniform +/- 1/sqrt(fan_in))."""
    k1, k2, k3, k4 = jax.random.split(key, 4)
    bound1 = 1.0 / (INPUT_DIM ** 0.5)
    bound2 = 1.0 / (HIDDEN_DIM ** 0.5)
    w1 = jax.random.uniform(k1, (HIDDEN_DIM, INPUT_DIM), jnp.float32, -bound1, bound1)
    b1 = jax.random.uniform(k2, (HIDDEN_DIM,), jnp.float32, -bound1, bound1)
    w2 = jax.random.uniform(k3, (OUTPUT_DIM, HIDDEN_DIM), jnp.float32, -bound2, bound2)
    b2 = jax.random.uniform(k4, (OUTPUT_DIM,), jnp.float32, -bound2, bound2)
    return w1, b1, w2, b2


def ttt_proxy_forward(state0, actions, params, max_len=9):
    """state0: (B, 9) f32; actions: (B, L) int32 in [0, 9). Returns (B, max_len, 3)."""
    B = state0.shape[0]
    assert actions.ndim == 2 and actions.shape[0] == B
    # Mirror PyTorch semantics (which would index-error); also prevents OOB VMEM reads.
    assert actions.shape[1] >= max_len, "actions must provide at least max_len steps"
    w1, b1, w2, b2 = params

    w1_t = jnp.transpose(w1)                 # (18, 180)
    w1s_t = w1_t[:STATE_DIM]                 # (9, 180)  acts on state
    w1a_t = w1_t[STATE_DIM:]                 # (9, 180)  acts on action one-hot

    # Fold one-hot action matmul + b1 into a pre-gathered per-step bias:
    #   onehot(a) @ W1a^T + b1 == W1a^T[a] + b1
    act_bias = jnp.take(w1a_t, actions[:, :max_len], axis=0) + b1    # (B, L, 180)
    act_bias = jnp.transpose(act_bias, (1, 0, 2))                    # (L, B, 180)

    # Lane-aligned 128-wide layout for the second Linear's output:
    #   lanes [0:3) -> result logits, lanes [3:12) -> next state, rest zero.
    w2_t = jnp.transpose(w2)                                         # (180, 12)
    w2_pad = jnp.zeros((HIDDEN_DIM, PAD_DIM), jnp.float32)
    w2_pad = w2_pad.at[:, :RESULT_DIM].set(w2_t[:, STATE_DIM:])
    w2_pad = w2_pad.at[:, RESULT_DIM:RESULT_DIM + STATE_DIM].set(w2_t[:, :STATE_DIM])
    b2_pad = jnp.zeros((1, PAD_DIM), jnp.float32)
    b2_pad = b2_pad.at[0, :RESULT_DIM].set(b2[STATE_DIM:])
    b2_pad = b2_pad.at[0, RESULT_DIM:RESULT_DIM + STATE_DIM].set(b2[:STATE_DIM])

    # Matching 128-row first-layer state weights (rows outside [3:12) are zero).
    w1s_pad = jnp.zeros((PAD_DIM, HIDDEN_DIM), jnp.float32)
    w1s_pad = w1s_pad.at[RESULT_DIM:RESULT_DIM + STATE_DIM].set(w1s_t)

    # Initial state in the same 128-wide layout.
    state0_pad = jnp.zeros((B, PAD_DIM), jnp.float32)
    state0_pad = state0_pad.at[:, RESULT_DIM:RESULT_DIM + STATE_DIM].set(state0)

    # Advisory scheduling hint (exact values are not load-bearing).
    flops = 4 * max_len * B * PAD_DIM * HIDDEN_DIM
    transcendentals = max_len * (B * PAD_DIM + B)
    bytes_accessed = 4 * (
        B * PAD_DIM                      # state0
        + max_len * B * HIDDEN_DIM       # act_bias
        + PAD_DIM * HIDDEN_DIM * 2       # w1s, w2
        + PAD_DIM                        # b2
        + max_len * B * PAD_DIM          # output
    )

    vmem = pl.BlockSpec(memory_space=pltpu.MemorySpace.VMEM)
    out = pl.pallas_call(
        _ttt_proxy_kernel,
        out_shape=jax.ShapeDtypeStruct((max_len, B, PAD_DIM), jnp.float32),
        in_specs=[vmem] * 5,
        out_specs=vmem,
        cost_estimate=pl.CostEstimate(
            flops=flops,
            transcendentals=transcendentals,
            bytes_accessed=bytes_accessed,
        ),
    )(state0_pad, act_bias, w1s_pad, w2_pad, b2_pad)

    # (L, B, 128) -> (B, L, 3)
    return jnp.transpose(out[..., :RESULT_DIM], (1, 0, 2))


def ttt_proxy_reference(state0, actions, params, max_len=9):
    """Pure-JAX reference matching the PyTorch forward (eval mode)."""
    w1, b1, w2, b2 = params
    oh = jax.nn.one_hot(actions, ACTION_DIM, dtype=jnp.float32)      # (B, L, 9)
    state = state0
    results = []
    for step in range(max_len):
        x = jnp.concatenate([state, oh[:, step]], axis=1)            # (B, 18)
        h = jnp.maximum(x @ w1.T + b1, 0.0)
        y = h @ w2.T + b2
        state = jnp.maximum(y[:, :STATE_DIM], 0.0)
        results.append(jax.nn.softmax(y[:, STATE_DIM:], axis=1)[:, None, :])
    return jnp.concatenate(results, axis=1)


if __name__ == "__main__":
    key = jax.random.PRNGKey(0)
    kp, ks, ka = jax.random.split(key, 3)

    B, L = 2, 9
    params = init_params(kp)
    state0 = jax.random.uniform(ks, (B, STATE_DIM), jnp.float32, -1.0, 1.0)
    actions = jax.random.randint(ka, (B, L), 0, ACTION_DIM, dtype=jnp.int32)

    out = ttt_proxy_forward(state0, actions, params, max_len=L)
    out = jax.block_until_ready(out)

    ref = ttt_proxy_reference(state0, actions, params, max_len=L)
    assert out.shape == (B, L, RESULT_DIM)
    # Tolerance covers pl.reciprocal(approx=True) (EUP approx reciprocal,
    # ~fp22 accuracy) in the softmax normalization.
    assert jnp.allclose(out, ref, atol=1e-3, rtol=1e-3), "mismatch vs reference"

    print("KERNEL_OK")
</pallas_src>

<mosaic_0001>
module attributes {stable_mosaic.version = 11 : i64} {
  func.func @_ttt_proxy_kernel(%arg0: memref<2x128xf32, #tpu.memory_space<vmem>>, %arg1: memref<9x2x180xf32, #tpu.memory_space<vmem>>, %arg2: memref<128x180xf32, #tpu.memory_space<vmem>>, %arg3: memref<180x128xf32, #tpu.memory_space<vmem>>, %arg4: memref<1x128xf32, #tpu.memory_space<vmem>>, %arg5: memref<9x2x128xf32, #tpu.memory_space<vmem>>) attributes {dimension_semantics = [], scalar_prefetch = 0 : i64, scratch_operands = 0 : i64, tpu.core_type = #tpu.core_type<tc>} {
    %c0 = arith.constant 0 : index
    %c0_0 = arith.constant 0 : index
    %0 = vector.load %arg2[%c0, %c0_0] : memref<128x180xf32, #tpu.memory_space<vmem>>, vector<128x180xf32>
    %c0_1 = arith.constant 0 : index
    %c0_2 = arith.constant 0 : index
    %1 = vector.load %arg3[%c0_1, %c0_2] : memref<180x128xf32, #tpu.memory_space<vmem>>, vector<180x128xf32>
    %c0_3 = arith.constant 0 : index
    %c0_4 = arith.constant 0 : index
    %2 = vector.load %arg4[%c0_3, %c0_4] : memref<1x128xf32, #tpu.memory_space<vmem>>, vector<1x128xf32>
    %3 = tpu.iota {dimensions = array<i32: 1>} : vector<2x128xi32>
    %c3_i32 = arith.constant 3 : i32
    %4 = vector.broadcast %c3_i32 : i32 to vector<2x128xi32>
    %5 = arith.cmpi slt, %3, %4 : vector<2x128xi32>
    %c0_5 = arith.constant 0 : index
    %c0_6 = arith.constant 0 : index
    %6 = vector.load %arg0[%c0_5, %c0_6] : memref<2x128xf32, #tpu.memory_space<vmem>>, vector<2x128xf32>
    %cst = arith.constant dense<0.000000e+00> : vector<2x180xf32>
    %7 = tpu.matmul %6, %0, %cst {dimension_numbers = #tpu.dot_dimension_numbers<[1], [0], [0], [1], [0, 0, 1, 1], [], []>} : vector<2x128xf32>, vector<128x180xf32>, vector<2x180xf32> -> vector<2x180xf32>
    %c0_7 = arith.constant 0 : index
    %c0_8 = arith.constant 0 : index
    %c0_9 = arith.constant 0 : index
    %8 = vector.load %arg1[%c0_7, %c0_8, %c0_9] : memref<9x2x180xf32, #tpu.memory_space<vmem>>, vector<1x2x180xf32>
    %9 = vector.shape_cast %8 : vector<1x2x180xf32> to vector<2x180xf32>
    %10 = arith.addf %7, %9 : vector<2x180xf32>
    %cst_10 = arith.constant 0.000000e+00 : f32
    %11 = vector.broadcast %cst_10 : f32 to vector<2x180xf32>
    %12 = arith.maximumf %10, %11 : vector<2x180xf32>
    %cst_11 = arith.constant dense<0.000000e+00> : vector<2x128xf32>
    %13 = tpu.matmul %12, %1, %cst_11 {dimension_numbers = #tpu.dot_dimension_numbers<[1], [0], [0], [1], [0, 0, 1, 1], [], []>} : vector<2x180xf32>, vector<180x128xf32>, vector<2x128xf32> -> vector<2x128xf32>
    %14 = vector.broadcast %2 : vector<1x128xf32> to vector<2x128xf32>
    %15 = arith.addf %13, %14 : vector<2x128xf32>
    %cst_12 = arith.constant -1.000000e+30 : f32
    %16 = vector.broadcast %cst_12 : f32 to vector<2x128xf32>
    %17 = arith.select %5, %15, %16 : vector<2x128xi1>, vector<2x128xf32>
    %cst_13 = arith.constant dense<0xFF800000> : vector<2xf32>
    %18 = vector.multi_reduction <maximumf>, %17, %cst_13 [1] : vector<2x128xf32> to vector<2xf32>
    %19 = vector.shape_cast %18 : vector<2xf32> to vector<2x1xf32>
    %20 = vector.broadcast %19 : vector<2x1xf32> to vector<2x128xf32>
    %21 = arith.subf %17, %20 : vector<2x128xf32>
    %22 = math.exp %21 : vector<2x128xf32>
    %cst_14 = arith.constant dense<0.000000e+00> : vector<2xf32>
    %23 = vector.multi_reduction <add>, %22, %cst_14 [1] : vector<2x128xf32> to vector<2xf32>
    %24 = vector.shape_cast %23 : vector<2xf32> to vector<2x1xf32>
    %25 = tpu.reciprocal %24 {approx = true} : vector<2x1xf32> -> vector<2x1xf32>
    %26 = vector.broadcast %25 : vector<2x1xf32> to vector<2x128xf32>
    %27 = arith.mulf %22, %26 : vector<2x128xf32>
    %c0_15 = arith.constant 0 : index
    %c0_16 = arith.constant 0 : index
    %c0_17 = arith.constant 0 : index
    %28 = vector.load %arg5[%c0_15, %c0_16, %c0_17] : memref<9x2x128xf32, #tpu.memory_space<vmem>>, vector<1x2x128xf32>
    %29 = vector.shape_cast %28 : vector<1x2x128xf32> to vector<2x128xf32>
    %30 = vector.shape_cast %27 : vector<2x128xf32> to vector<1x2x128xf32>
    tpu.vector_store %arg5[%c0_15, %c0_16, %c0_17], %30 {strides = array<i32>} : memref<9x2x128xf32, #tpu.memory_space<vmem>>, vector<1x2x128xf32>,
    %cst_18 = arith.constant 0.000000e+00 : f32
    %31 = vector.broadcast %cst_18 : f32 to vector<2x128xf32>
    %32 = arith.maximumf %15, %31 : vector<2x128xf32>
    %cst_19 = arith.constant dense<0.000000e+00> : vector<2x180xf32>
    %33 = tpu.matmul %32, %0, %cst_19 {dimension_numbers = #tpu.dot_dimension_numbers<[1], [0], [0], [1], [0, 0, 1, 1], [], []>} : vector<2x128xf32>, vector<128x180xf32>, vector<2x180xf32> -> vector<2x180xf32>
    %c1 = arith.constant 1 : index
    %c0_20 = arith.constant 0 : index
    %c0_21 = arith.constant 0 : index
    %34 = vector.load %arg1[%c1, %c0_20, %c0_21] : memref<9x2x180xf32, #tpu.memory_space<vmem>>, vector<1x2x180xf32>
    %35 = vector.shape_cast %34 : vector<1x2x180xf32> to vector<2x180xf32>
    %36 = arith.addf %33, %35 : vector<2x180xf32>
    %cst_22 = arith.constant 0.000000e+00 : f32
    %37 = vector.broadcast %cst_22 : f32 to vector<2x180xf32>
    %38 = arith.maximumf %36, %37 : vector<2x180xf32>
    %cst_23 = arith.constant dense<0.000000e+00> : vector<2x128xf32>
    %39 = tpu.matmul %38, %1, %cst_23 {dimension_numbers = #tpu.dot_dimension_numbers<[1], [0], [0], [1], [0, 0, 1, 1], [], []>} : vector<2x180xf32>, vector<180x128xf32>, vector<2x128xf32> -> vector<2x128xf32>
    %40 = vector.broadcast %2 : vector<1x128xf32> to vector<2x128xf32>
    %41 = arith.addf %39, %40 : vector<2x128xf32>
    %cst_24 = arith.constant -1.000000e+30 : f32
    %42 = vector.broadcast %cst_24 : f32 to vector<2x128xf32>
    %43 = arith.select %5, %41, %42 : vector<2x128xi1>, vector<2x128xf32>
    %cst_25 = arith.constant dense<0xFF800000> : vector<2xf32>
    %44 = vector.multi_reduction <maximumf>, %43, %cst_25 [1] : vector<2x128xf32> to vector<2xf32>
    %45 = vector.shape_cast %44 : vector<2xf32> to vector<2x1xf32>
    %46 = vector.broadcast %45 : vector<2x1xf32> to vector<2x128xf32>
    %47 = arith.subf %43, %46 : vector<2x128xf32>
    %48 = math.exp %47 : vector<2x128xf32>
    %cst_26 = arith.constant dense<0.000000e+00> : vector<2xf32>
    %49 = vector.multi_reduction <add>, %48, %cst_26 [1] : vector<2x128xf32> to vector<2xf32>
    %50 = vector.shape_cast %49 : vector<2xf32> to vector<2x1xf32>
    %51 = tpu.reciprocal %50 {approx = true} : vector<2x1xf32> -> vector<2x1xf32>
    %52 = vector.broadcast %51 : vector<2x1xf32> to vector<2x128xf32>
    %53 = arith.mulf %48, %52 : vector<2x128xf32>
    %c1_27 = arith.constant 1 : index
    %c0_28 = arith.constant 0 : index
    %c0_29 = arith.constant 0 : index
    %54 = vector.load %arg5[%c1_27, %c0_28, %c0_29] : memref<9x2x128xf32, #tpu.memory_space<vmem>>, vector<1x2x128xf32>
    %55 = vector.shape_cast %54 : vector<1x2x128xf32> to vector<2x128xf32>
    %56 = vector.shape_cast %53 : vector<2x128xf32> to vector<1x2x128xf32>
    tpu.vector_store %arg5[%c1_27, %c0_28, %c0_29], %56 {strides = array<i32>} : memref<9x2x128xf32, #tpu.memory_space<vmem>>, vector<1x2x128xf32>,
    %cst_30 = arith.constant 0.000000e+00 : f32
    %57 = vector.broadcast %cst_30 : f32 to vector<2x128xf32>
    %58 = arith.maximumf %41, %57 : vector<2x128xf32>
    %cst_31 = arith.constant dense<0.000000e+00> : vector<2x180xf32>
    %59 = tpu.matmul %58, %0, %cst_31 {dimension_numbers = #tpu.dot_dimension_numbers<[1], [0], [0], [1], [0, 0, 1, 1], [], []>} : vector<2x128xf32>, vector<128x180xf32>, vector<2x180xf32> -> vector<2x180xf32>
    %c2 = arith.constant 2 : index
    %c0_32 = arith.constant 0 : index
    %c0_33 = arith.constant 0 : index
    %60 = vector.load %arg1[%c2, %c0_32, %c0_33] : memref<9x2x180xf32, #tpu.memory_space<vmem>>, vector<1x2x180xf32>
    %61 = vector.shape_cast %60 : vector<1x2x180xf32> to vector<2x180xf32>
    %62 = arith.addf %59, %61 : vector<2x180xf32>
    %cst_34 = arith.constant 0.000000e+00 : f32
    %63 = vector.broadcast %cst_34 : f32 to vector<2x180xf32>
    %64 = arith.maximumf %62, %63 : vector<2x180xf32>
    %cst_35 = arith.constant dense<0.000000e+00> : vector<2x128xf32>
    %65 = tpu.matmul %64, %1, %cst_35 {dimension_numbers = #tpu.dot_dimension_numbers<[1], [0], [0], [1], [0, 0, 1, 1], [], []>} : vector<2x180xf32>, vector<180x128xf32>, vector<2x128xf32> -> vector<2x128xf32>
    %66 = vector.broadcast %2 : vector<1x128xf32> to vector<2x128xf32>
    %67 = arith.addf %65, %66 : vector<2x128xf32>
    %cst_36 = arith.constant -1.000000e+30 : f32
    %68 = vector.broadcast %cst_36 : f32 to vector<2x128xf32>
    %69 = arith.select %5, %67, %68 : vector<2x128xi1>, vector<2x128xf32>
    %cst_37 = arith.constant dense<0xFF800000> : vector<2xf32>
    %70 = vector.multi_reduction <maximumf>, %69, %cst_37 [1] : vector<2x128xf32> to vector<2xf32>
    %71 = vector.shape_cast %70 : vector<2xf32> to vector<2x1xf32>
    %72 = vector.broadcast %71 : vector<2x1xf32> to vector<2x128xf32>
    %73 = arith.subf %69, %72 : vector<2x128xf32>
    %74 = math.exp %73 : vector<2x128xf32>
    %cst_38 = arith.constant dense<0.000000e+00> : vector<2xf32>
    %75 = vector.multi_reduction <add>, %74, %cst_38 [1] : vector<2x128xf32> to vector<2xf32>
    %76 = vector.shape_cast %75 : vector<2xf32> to vector<2x1xf32>
    %77 = tpu.reciprocal %76 {approx = true} : vector<2x1xf32> -> vector<2x1xf32>
    %78 = vector.broadcast %77 : vector<2x1xf32> to vector<2x128xf32>
    %79 = arith.mulf %74, %78 : vector<2x128xf32>
    %c2_39 = arith.constant 2 : index
    %c0_40 = arith.constant 0 : index
    %c0_41 = arith.constant 0 : index
    %80 = vector.load %arg5[%c2_39, %c0_40, %c0_41] : memref<9x2x128xf32, #tpu.memory_space<vmem>>, vector<1x2x128xf32>
    %81 = vector.shape_cast %80 : vector<1x2x128xf32> to vector<2x128xf32>
    %82 = vector.shape_cast %79 : vector<2x128xf32> to vector<1x2x128xf32>
    tpu.vector_store %arg5[%c2_39, %c0_40, %c0_41], %82 {strides = array<i32>} : memref<9x2x128xf32, #tpu.memory_space<vmem>>, vector<1x2x128xf32>,
    %cst_42 = arith.constant 0.000000e+00 : f32
    %83 = vector.broadcast %cst_42 : f32 to vector<2x128xf32>
    %84 = arith.maximumf %67, %83 : vector<2x128xf32>
    %cst_43 = arith.constant dense<0.000000e+00> : vector<2x180xf32>
    %85 = tpu.matmul %84, %0, %cst_43 {dimension_numbers = #tpu.dot_dimension_numbers<[1], [0], [0], [1], [0, 0, 1, 1], [], []>} : vector<2x128xf32>, vector<128x180xf32>, vector<2x180xf32> -> vector<2x180xf32>
    %c3 = arith.constant 3 : index
    %c0_44 = arith.constant 0 : index
    %c0_45 = arith.constant 0 : index
    %86 = vector.load %arg1[%c3, %c0_44, %c0_45] : memref<9x2x180xf32, #tpu.memory_space<vmem>>, vector<1x2x180xf32>
    %87 = vector.shape_cast %86 : vector<1x2x180xf32> to vector<2x180xf32>
    %88 = arith.addf %85, %87 : vector<2x180xf32>
    %cst_46 = arith.constant 0.000000e+00 : f32
    %89 = vector.broadcast %cst_46 : f32 to vector<2x180xf32>
    %90 = arith.maximumf %88, %89 : vector<2x180xf32>
    %cst_47 = arith.constant dense<0.000000e+00> : vector<2x128xf32>
    %91 = tpu.matmul %90, %1, %cst_47 {dimension_numbers = #tpu.dot_dimension_numbers<[1], [0], [0], [1], [0, 0, 1, 1], [], []>} : vector<2x180xf32>, vector<180x128xf32>, vector<2x128xf32> -> vector<2x128xf32>
    %92 = vector.broadcast %2 : vector<1x128xf32> to vector<2x128xf32>
    %93 = arith.addf %91, %92 : vector<2x128xf32>
    %cst_48 = arith.constant -1.000000e+30 : f32
    %94 = vector.broadcast %cst_48 : f32 to vector<2x128xf32>
    %95 = arith.select %5, %93, %94 : vector<2x128xi1>, vector<2x128xf32>
    %cst_49 = arith.constant dense<0xFF800000> : vector<2xf32>
    %96 = vector.multi_reduction <maximumf>, %95, %cst_49 [1] : vector<2x128xf32> to vector<2xf32>
    %97 = vector.shape_cast %96 : vector<2xf32> to vector<2x1xf32>
    %98 = vector.broadcast %97 : vector<2x1xf32> to vector<2x128xf32>
    %99 = arith.subf %95, %98 : vector<2x128xf32>
    %100 = math.exp %99 : vector<2x128xf32>
    %cst_50 = arith.constant dense<0.000000e+00> : vector<2xf32>
    %101 = vector.multi_reduction <add>, %100, %cst_50 [1] : vector<2x128xf32> to vector<2xf32>
    %102 = vector.shape_cast %101 : vector<2xf32> to vector<2x1xf32>
    %103 = tpu.reciprocal %102 {approx = true} : vector<2x1xf32> -> vector<2x1xf32>
    %104 = vector.broadcast %103 : vector<2x1xf32> to vector<2x128xf32>
    %105 = arith.mulf %100, %104 : vector<2x128xf32>
    %c3_51 = arith.constant 3 : index
    %c0_52 = arith.constant 0 : index
    %c0_53 = arith.constant 0 : index
    %106 = vector.load %arg5[%c3_51, %c0_52, %c0_53] : memref<9x2x128xf32, #tpu.memory_space<vmem>>, vector<1x2x128xf32>
    %107 = vector.shape_cast %106 : vector<1x2x128xf32> to vector<2x128xf32>
    %108 = vector.shape_cast %105 : vector<2x128xf32> to vector<1x2x128xf32>
    tpu.vector_store %arg5[%c3_51, %c0_52, %c0_53], %108 {strides = array<i32>} : memref<9x2x128xf32, #tpu.memory_space<vmem>>, vector<1x2x128xf32>,
    %cst_54 = arith.constant 0.000000e+00 : f32
    %109 = vector.broadcast %cst_54 : f32 to vector<2x128xf32>
    %110 = arith.maximumf %93, %109 : vector<2x128xf32>
    %cst_55 = arith.constant dense<0.000000e+00> : vector<2x180xf32>
    %111 = tpu.matmul %110, %0, %cst_55 {dimension_numbers = #tpu.dot_dimension_numbers<[1], [0], [0], [1], [0, 0, 1, 1], [], []>} : vector<2x128xf32>, vector<128x180xf32>, vector<2x180xf32> -> vector<2x180xf32>
    %c4 = arith.constant 4 : index
    %c0_56 = arith.constant 0 : index
    %c0_57 = arith.constant 0 : index
    %112 = vector.load %arg1[%c4, %c0_56, %c0_57] : memref<9x2x180xf32, #tpu.memory_space<vmem>>, vector<1x2x180xf32>
    %113 = vector.shape_cast %112 : vector<1x2x180xf32> to vector<2x180xf32>
    %114 = arith.addf %111, %113 : vector<2x180xf32>
    %cst_58 = arith.constant 0.000000e+00 : f32
    %115 = vector.broadcast %cst_58 : f32 to vector<2x180xf32>
    %116 = arith.maximumf %114, %115 : vector<2x180xf32>
    %cst_59 = arith.constant dense<0.000000e+00> : vector<2x128xf32>
    %117 = tpu.matmul %116, %1, %cst_59 {dimension_numbers = #tpu.dot_dimension_numbers<[1], [0], [0], [1], [0, 0, 1, 1], [], []>} : vector<2x180xf32>, vector<180x128xf32>, vector<2x128xf32> -> vector<2x128xf32>
    %118 = vector.broadcast %2 : vector<1x128xf32> to vector<2x128xf32>
    %119 = arith.addf %117, %118 : vector<2x128xf32>
    %cst_60 = arith.constant -1.000000e+30 : f32
    %120 = vector.broadcast %cst_60 : f32 to vector<2x128xf32>
    %121 = arith.select %5, %119, %120 : vector<2x128xi1>, vector<2x128xf32>
    %cst_61 = arith.constant dense<0xFF800000> : vector<2xf32>
    %122 = vector.multi_reduction <maximumf>, %121, %cst_61 [1] : vector<2x128xf32> to vector<2xf32>
    %123 = vector.shape_cast %122 : vector<2xf32> to vector<2x1xf32>
    %124 = vector.broadcast %123 : vector<2x1xf32> to vector<2x128xf32>
    %125 = arith.subf %121, %124 : vector<2x128xf32>
    %126 = math.exp %125 : vector<2x128xf32>
    %cst_62 = arith.constant dense<0.000000e+00> : vector<2xf32>
    %127 = vector.multi_reduction <add>, %126, %cst_62 [1] : vector<2x128xf32> to vector<2xf32>
    %128 = vector.shape_cast %127 : vector<2xf32> to vector<2x1xf32>
    %129 = tpu.reciprocal %128 {approx = true} : vector<2x1xf32> -> vector<2x1xf32>
    %130 = vector.broadcast %129 : vector<2x1xf32> to vector<2x128xf32>
    %131 = arith.mulf %126, %130 : vector<2x128xf32>
    %c4_63 = arith.constant 4 : index
    %c0_64 = arith.constant 0 : index
    %c0_65 = arith.constant 0 : index
    %132 = vector.load %arg5[%c4_63, %c0_64, %c0_65] : memref<9x2x128xf32, #tpu.memory_space<vmem>>, vector<1x2x128xf32>
    %133 = vector.shape_cast %132 : vector<1x2x128xf32> to vector<2x128xf32>
    %134 = vector.shape_cast %131 : vector<2x128xf32> to vector<1x2x128xf32>
    tpu.vector_store %arg5[%c4_63, %c0_64, %c0_65], %134 {strides = array<i32>} : memref<9x2x128xf32, #tpu.memory_space<vmem>>, vector<1x2x128xf32>,
    %cst_66 = arith.constant 0.000000e+00 : f32
    %135 = vector.broadcast %cst_66 : f32 to vector<2x128xf32>
    %136 = arith.maximumf %119, %135 : vector<2x128xf32>
    %cst_67 = arith.constant dense<0.000000e+00> : vector<2x180xf32>
    %137 = tpu.matmul %136, %0, %cst_67 {dimension_numbers = #tpu.dot_dimension_numbers<[1], [0], [0], [1], [0, 0, 1, 1], [], []>} : vector<2x128xf32>, vector<128x180xf32>, vector<2x180xf32> -> vector<2x180xf32>
    %c5 = arith.constant 5 : index
    %c0_68 = arith.constant 0 : index
    %c0_69 = arith.constant 0 : index
    %138 = vector.load %arg1[%c5, %c0_68, %c0_69] : memref<9x2x180xf32, #tpu.memory_space<vmem>>, vector<1x2x180xf32>
    %139 = vector.shape_cast %138 : vector<1x2x180xf32> to vector<2x180xf32>
    %140 = arith.addf %137, %139 : vector<2x180xf32>
    %cst_70 = arith.constant 0.000000e+00 : f32
    %141 = vector.broadcast %cst_70 : f32 to vector<2x180xf32>
    %142 = arith.maximumf %140, %141 : vector<2x180xf32>
    %cst_71 = arith.constant dense<0.000000e+00> : vector<2x128xf32>
    %143 = tpu.matmul %142, %1, %cst_71 {dimension_numbers = #tpu.dot_dimension_numbers<[1], [0], [0], [1], [0, 0, 1, 1], [], []>} : vector<2x180xf32>, vector<180x128xf32>, vector<2x128xf32> -> vector<2x128xf32>
    %144 = vector.broadcast %2 : vector<1x128xf32> to vector<2x128xf32>
    %145 = arith.addf %143, %144 : vector<2x128xf32>
    %cst_72 = arith.constant -1.000000e+30 : f32
    %146 = vector.broadcast %cst_72 : f32 to vector<2x128xf32>
    %147 = arith.select %5, %145, %146 : vector<2x128xi1>, vector<2x128xf32>
    %cst_73 = arith.constant dense<0xFF800000> : vector<2xf32>
    %148 = vector.multi_reduction <maximumf>, %147, %cst_73 [1] : vector<2x128xf32> to vector<2xf32>
    %149 = vector.shape_cast %148 : vector<2xf32> to vector<2x1xf32>
    %150 = vector.broadcast %149 : vector<2x1xf32> to vector<2x128xf32>
    %151 = arith.subf %147, %150 : vector<2x128xf32>
    %152 = math.exp %151 : vector<2x128xf32>
    %cst_74 = arith.constant dense<0.000000e+00> : vector<2xf32>
    %153 = vector.multi_reduction <add>, %152, %cst_74 [1] : vector<2x128xf32> to vector<2xf32>
    %154 = vector.shape_cast %153 : vector<2xf32> to vector<2x1xf32>
    %155 = tpu.reciprocal %154 {approx = true} : vector<2x1xf32> -> vector<2x1xf32>
    %156 = vector.broadcast %155 : vector<2x1xf32> to vector<2x128xf32>
    %157 = arith.mulf %152, %156 : vector<2x128xf32>
    %c5_75 = arith.constant 5 : index
    %c0_76 = arith.constant 0 : index
    %c0_77 = arith.constant 0 : index
    %158 = vector.load %arg5[%c5_75, %c0_76, %c0_77] : memref<9x2x128xf32, #tpu.memory_space<vmem>>, vector<1x2x128xf32>
    %159 = vector.shape_cast %158 : vector<1x2x128xf32> to vector<2x128xf32>
    %160 = vector.shape_cast %157 : vector<2x128xf32> to vector<1x2x128xf32>
    tpu.vector_store %arg5[%c5_75, %c0_76, %c0_77], %160 {strides = array<i32>} : memref<9x2x128xf32, #tpu.memory_space<vmem>>, vector<1x2x128xf32>,
    %cst_78 = arith.constant 0.000000e+00 : f32
    %161 = vector.broadcast %cst_78 : f32 to vector<2x128xf32>
    %162 = arith.maximumf %145, %161 : vector<2x128xf32>
    %cst_79 = arith.constant dense<0.000000e+00> : vector<2x180xf32>
    %163 = tpu.matmul %162, %0, %cst_79 {dimension_numbers = #tpu.dot_dimension_numbers<[1], [0], [0], [1], [0, 0, 1, 1], [], []>} : vector<2x128xf32>, vector<128x180xf32>, vector<2x180xf32> -> vector<2x180xf32>
    %c6 = arith.constant 6 : index
    %c0_80 = arith.constant 0 : index
    %c0_81 = arith.constant 0 : index
    %164 = vector.load %arg1[%c6, %c0_80, %c0_81] : memref<9x2x180xf32, #tpu.memory_space<vmem>>, vector<1x2x180xf32>
    %165 = vector.shape_cast %164 : vector<1x2x180xf32> to vector<2x180xf32>
    %166 = arith.addf %163, %165 : vector<2x180xf32>
    %cst_82 = arith.constant 0.000000e+00 : f32
    %167 = vector.broadcast %cst_82 : f32 to vector<2x180xf32>
    %168 = arith.maximumf %166, %167 : vector<2x180xf32>
    %cst_83 = arith.constant dense<0.000000e+00> : vector<2x128xf32>
    %169 = tpu.matmul %168, %1, %cst_83 {dimension_numbers = #tpu.dot_dimension_numbers<[1], [0], [0], [1], [0, 0, 1, 1], [], []>} : vector<2x180xf32>, vector<180x128xf32>, vector<2x128xf32> -> vector<2x128xf32>
    %170 = vector.broadcast %2 : vector<1x128xf32> to vector<2x128xf32>
    %171 = arith.addf %169, %170 : vector<2x128xf32>
    %cst_84 = arith.constant -1.000000e+30 : f32
    %172 = vector.broadcast %cst_84 : f32 to vector<2x128xf32>
    %173 = arith.select %5, %171, %172 : vector<2x128xi1>, vector<2x128xf32>
    %cst_85 = arith.constant dense<0xFF800000> : vector<2xf32>
    %174 = vector.multi_reduction <maximumf>, %173, %cst_85 [1] : vector<2x128xf32> to vector<2xf32>
    %175 = vector.shape_cast %174 : vector<2xf32> to vector<2x1xf32>
    %176 = vector.broadcast %175 : vector<2x1xf32> to vector<2x128xf32>
    %177 = arith.subf %173, %176 : vector<2x128xf32>
    %178 = math.exp %177 : vector<2x128xf32>
    %cst_86 = arith.constant dense<0.000000e+00> : vector<2xf32>
    %179 = vector.multi_reduction <add>, %178, %cst_86 [1] : vector<2x128xf32> to vector<2xf32>
    %180 = vector.shape_cast %179 : vector<2xf32> to vector<2x1xf32>
    %181 = tpu.reciprocal %180 {approx = true} : vector<2x1xf32> -> vector<2x1xf32>
    %182 = vector.broadcast %181 : vector<2x1xf32> to vector<2x128xf32>
    %183 = arith.mulf %178, %182 : vector<2x128xf32>
    %c6_87 = arith.constant 6 : index
    %c0_88 = arith.constant 0 : index
    %c0_89 = arith.constant 0 : index
    %184 = vector.load %arg5[%c6_87, %c0_88, %c0_89] : memref<9x2x128xf32, #tpu.memory_space<vmem>>, vector<1x2x128xf32>
    %185 = vector.shape_cast %184 : vector<1x2x128xf32> to vector<2x128xf32>
    %186 = vector.shape_cast %183 : vector<2x128xf32> to vector<1x2x128xf32>
    tpu.vector_store %arg5[%c6_87, %c0_88, %c0_89], %186 {strides = array<i32>} : memref<9x2x128xf32, #tpu.memory_space<vmem>>, vector<1x2x128xf32>,
    %cst_90 = arith.constant 0.000000e+00 : f32
    %187 = vector.broadcast %cst_90 : f32 to vector<2x128xf32>
    %188 = arith.maximumf %171, %187 : vector<2x128xf32>
    %cst_91 = arith.constant dense<0.000000e+00> : vector<2x180xf32>
    %189 = tpu.matmul %188, %0, %cst_91 {dimension_numbers = #tpu.dot_dimension_numbers<[1], [0], [0], [1], [0, 0, 1, 1], [], []>} : vector<2x128xf32>, vector<128x180xf32>, vector<2x180xf32> -> vector<2x180xf32>
    %c7 = arith.constant 7 : index
    %c0_92 = arith.constant 0 : index
    %c0_93 = arith.constant 0 : index
    %190 = vector.load %arg1[%c7, %c0_92, %c0_93] : memref<9x2x180xf32, #tpu.memory_space<vmem>>, vector<1x2x180xf32>
    %191 = vector.shape_cast %190 : vector<1x2x180xf32> to vector<2x180xf32>
    %192 = arith.addf %189, %191 : vector<2x180xf32>
    %cst_94 = arith.constant 0.000000e+00 : f32
    %193 = vector.broadcast %cst_94 : f32 to vector<2x180xf32>
    %194 = arith.maximumf %192, %193 : vector<2x180xf32>
    %cst_95 = arith.constant dense<0.000000e+00> : vector<2x128xf32>
    %195 = tpu.matmul %194, %1, %cst_95 {dimension_numbers = #tpu.dot_dimension_numbers<[1], [0], [0], [1], [0, 0, 1, 1], [], []>} : vector<2x180xf32>, vector<180x128xf32>, vector<2x128xf32> -> vector<2x128xf32>
    %196 = vector.broadcast %2 : vector<1x128xf32> to vector<2x128xf32>
    %197 = arith.addf %195, %196 : vector<2x128xf32>
    %cst_96 = arith.constant -1.000000e+30 : f32
    %198 = vector.broadcast %cst_96 : f32 to vector<2x128xf32>
    %199 = arith.select %5, %197, %198 : vector<2x128xi1>, vector<2x128xf32>
    %cst_97 = arith.constant dense<0xFF800000> : vector<2xf32>
    %200 = vector.multi_reduction <maximumf>, %199, %cst_97 [1] : vector<2x128xf32> to vector<2xf32>
    %201 = vector.shape_cast %200 : vector<2xf32> to vector<2x1xf32>
    %202 = vector.broadcast %201 : vector<2x1xf32> to vector<2x128xf32>
    %203 = arith.subf %199, %202 : vector<2x128xf32>
    %204 = math.exp %203 : vector<2x128xf32>
    %cst_98 = arith.constant dense<0.000000e+00> : vector<2xf32>
    %205 = vector.multi_reduction <add>, %204, %cst_98 [1] : vector<2x128xf32> to vector<2xf32>
    %206 = vector.shape_cast %205 : vector<2xf32> to vector<2x1xf32>
    %207 = tpu.reciprocal %206 {approx = true} : vector<2x1xf32> -> vector<2x1xf32>
    %208 = vector.broadcast %207 : vector<2x1xf32> to vector<2x128xf32>
    %209 = arith.mulf %204, %208 : vector<2x128xf32>
    %c7_99 = arith.constant 7 : index
    %c0_100 = arith.constant 0 : index
    %c0_101 = arith.constant 0 : index
    %210 = vector.load %arg5[%c7_99, %c0_100, %c0_101] : memref<9x2x128xf32, #tpu.memory_space<vmem>>, vector<1x2x128xf32>
    %211 = vector.shape_cast %210 : vector<1x2x128xf32> to vector<2x128xf32>
    %212 = vector.shape_cast %209 : vector<2x128xf32> to vector<1x2x128xf32>
    tpu.vector_store %arg5[%c7_99, %c0_100, %c0_101], %212 {strides = array<i32>} : memref<9x2x128xf32, #tpu.memory_space<vmem>>, vector<1x2x128xf32>,
    %cst_102 = arith.constant 0.000000e+00 : f32
    %213 = vector.broadcast %cst_102 : f32 to vector<2x128xf32>
    %214 = arith.maximumf %197, %213 : vector<2x128xf32>
    %cst_103 = arith.constant dense<0.000000e+00> : vector<2x180xf32>
    %215 = tpu.matmul %214, %0, %cst_103 {dimension_numbers = #tpu.dot_dimension_numbers<[1], [0], [0], [1], [0, 0, 1, 1], [], []>} : vector<2x128xf32>, vector<128x180xf32>, vector<2x180xf32> -> vector<2x180xf32>
    %c8 = arith.constant 8 : index
    %c0_104 = arith.constant 0 : index
    %c0_105 = arith.constant 0 : index
    %216 = vector.load %arg1[%c8, %c0_104, %c0_105] : memref<9x2x180xf32, #tpu.memory_space<vmem>>, vector<1x2x180xf32>
    %217 = vector.shape_cast %216 : vector<1x2x180xf32> to vector<2x180xf32>
    %218 = arith.addf %215, %217 : vector<2x180xf32>
    %cst_106 = arith.constant 0.000000e+00 : f32
    %219 = vector.broadcast %cst_106 : f32 to vector<2x180xf32>
    %220 = arith.maximumf %218, %219 : vector<2x180xf32>
    %cst_107 = arith.constant dense<0.000000e+00> : vector<2x128xf32>
    %221 = tpu.matmul %220, %1, %cst_107 {dimension_numbers = #tpu.dot_dimension_numbers<[1], [0], [0], [1], [0, 0, 1, 1], [], []>} : vector<2x180xf32>, vector<180x128xf32>, vector<2x128xf32> -> vector<2x128xf32>
    %222 = vector.broadcast %2 : vector<1x128xf32> to vector<2x128xf32>
    %223 = arith.addf %221, %222 : vector<2x128xf32>
    %cst_108 = arith.constant -1.000000e+30 : f32
    %224 = vector.broadcast %cst_108 : f32 to vector<2x128xf32>
    %225 = arith.select %5, %223, %224 : vector<2x128xi1>, vector<2x128xf32>
    %cst_109 = arith.constant dense<0xFF800000> : vector<2xf32>
    %226 = vector.multi_reduction <maximumf>, %225, %cst_109 [1] : vector<2x128xf32> to vector<2xf32>
    %227 = vector.shape_cast %226 : vector<2xf32> to vector<2x1xf32>
    %228 = vector.broadcast %227 : vector<2x1xf32> to vector<2x128xf32>
    %229 = arith.subf %225, %228 : vector<2x128xf32>
    %230 = math.exp %229 : vector<2x128xf32>
    %cst_110 = arith.constant dense<0.000000e+00> : vector<2xf32>
    %231 = vector.multi_reduction <add>, %230, %cst_110 [1] : vector<2x128xf32> to vector<2xf32>
    %232 = vector.shape_cast %231 : vector<2xf32> to vector<2x1xf32>
    %233 = tpu.reciprocal %232 {approx = true} : vector<2x1xf32> -> vector<2x1xf32>
    %234 = vector.broadcast %233 : vector<2x1xf32> to vector<2x128xf32>
    %235 = arith.mulf %230, %234 : vector<2x128xf32>
    %c8_111 = arith.constant 8 : index
    %c0_112 = arith.constant 0 : index
    %c0_113 = arith.constant 0 : index
    %236 = vector.load %arg5[%c8_111, %c0_112, %c0_113] : memref<9x2x128xf32, #tpu.memory_space<vmem>>, vector<1x2x128xf32>
    %237 = vector.shape_cast %236 : vector<1x2x128xf32> to vector<2x128xf32>
    %238 = vector.shape_cast %235 : vector<2x128xf32> to vector<1x2x128xf32>
    tpu.vector_store %arg5[%c8_111, %c0_112, %c0_113], %238 {strides = array<i32>} : memref<9x2x128xf32, #tpu.memory_space<vmem>>, vector<1x2x128xf32>,
    return
  }
}

</mosaic_0001>

<bundles_post_ra>
// kernel: tpu_custom_call.1
= control target key start
LH: loop header
LB: loop body
LE: loop exit
PB: predicated region body
PF: predicated region fallthrough
CT: control target
= control target key end

     0   :  { %v2358_v7 = vmov 0.0   ;;  %v2359_v8 = vmov 0.0|0.0   ;;  %s3127_s0 = inlined_call_operand.vmem [shape: f32[2,128], index: 0, kind: input, shape index: {}]   ;;  %s3128_s1 = inlined_call_operand.vmem [shape: f32[9,2,180], index: 1, kind: input, shape index: {}]   ;;  %s3129_s2 = inlined_call_operand.vmem [shape: f32[128,180], index: 2, kind: input, shape index: {}]   ;;  %s3130_s3 = inlined_call_operand.vmem [shape: f32[180,128], index: 3, kind: input, shape index: {}]   ;;  %s3131_s4 = inlined_call_operand.vmem [shape: f32[1,128], index: 4, kind: input, shape index: {}]   ;;  %s3132_s5 = inlined_call_operand.hbm [shape: f32[9,2,128], index: 5, kind: output, shape index: {}]  }
   0x1   :  { %v22_v0 = vld [vmem:[%s3129_s2 + $0x8] sm:$0xff]  ;;  %v24_v1 = vld [vmem:[%s3129_s2 + $0x18] sm:$0xff]  ;;  %v21_v2 = vld [vmem:[%s3129_s2] sm:$0xff]  ;;  %157 = vmatprep.mubr.f32.mxu0 %v2358_v7  ;;  %1740 = vmatprep.subr.bf16.mxu1 %v2359_v8 }
   0x2   :  { %v2402_v3 = vpack.c.bf16 %v24_v1, %v22_v0  ;;  %v23_v4 = vld [vmem:[%s3129_s2 + $0x10] sm:$0xff]  ;;  %v26_v5 = vld [vmem:[%s3129_s2 + $0x28] sm:$0xff]  ;;  %v28_v6 = vld [vmem:[%s3129_s2 + $0x38] sm:$0xff] }
   0x3   :  { %v2415_v9 = vpack.c.bf16 %v23_v4, %v21_v2  ;;  %v2417_v10 = vpack.c.bf16 %v28_v6, %v26_v5  ;;  %v25_v11 = vld [vmem:[%s3129_s2 + $0x20] sm:$0xff]  ;;  %v27_v12 = vld [vmem:[%s3129_s2 + $0x30] sm:$0xff]  ;;  %v30_v13 = vld [vmem:[%s3129_s2 + $0x48] sm:$0xff] }
   0x4   :  { %1709 = vmatprep.subr.bf16.mxu0 %v2402_v3  ;;  %v32_v14 = vld [vmem:[%s3129_s2 + $0x58] sm:$0xff]  ;;  %v2433_v15 = vpack.c.bf16 %v27_v12, %v25_v11  ;;  %v29_v17 = vld [vmem:[%s3129_s2 + $0x40] sm:$0xff]  ;;  %v31_v18 = vld [vmem:[%s3129_s2 + $0x50] sm:$0xff] }
   0x5   :  { %1711 = vmatpush1.bf16.msra.mxu0 %v2415_v9  ;;  %v2436_v16 = vpack.c.bf16 %v32_v14, %v30_v13  ;;  %v34_v19 = vld [vmem:[%s3129_s2 + $0x68] sm:$0xff]  ;;  %v36_v20 = vld [vmem:[%s3129_s2 + $0x78] sm:$0xff]  ;;  %v2451_v21 = vpack.c.bf16 %v31_v18, %v29_v17  ;;  %v33_v23 = vld [vmem:[%s3129_s2 + $0x60] sm:$0xff] }
   0x6   :  { %1713 = vmatprep.subr.bf16.mxu0 %v2417_v10  ;;  %v2454_v22 = vpack.c.bf16 %v36_v20, %v34_v19  ;;  %v35_v24 = vld [vmem:[%s3129_s2 + $0x70] sm:$0xff]  ;;  %v38_v25 = vld [vmem:[%s3129_s2 + $0x88] sm:$0xff]  ;;  %v40_v26 = vld [vmem:[%s3129_s2 + $0x98] sm:$0xff] }
   0x7   :  { %v53_v27 = vld [vmem:[%s3130_s3] sm:$0xff]  ;;  %v54_v28 = vld [vmem:[%s3130_s3 + $0x8] sm:$0xff]  ;;  %v55_v29 = vld [vmem:[%s3130_s3 + $0x10] sm:$0xff]  ;;  %v2478_v30 = vpack.c.bf16 %v35_v24, %v33_v23  ;;  %v2486_v33 = vpack.c.bf16 %v40_v26, %v38_v25 }
   0x8   :  { %v2480_v31 = vpack.c.bf16 %v54_v28, %v53_v27  ;;  %v56_v32 = vld [vmem:[%s3130_s3 + $0x18] sm:$0xff]  ;;  %v37_v34 = vld [vmem:[%s3129_s2 + $0x80] sm:$0xff]  ;;  %v39_v35 = vld [vmem:[%s3129_s2 + $0x90] sm:$0xff] }
   0x9   :  { %1715 = vmatpush1.bf16.msra.mxu0 %v2433_v15  ;;  %v42_v36 = vld [vmem:[%s3129_s2 + $0xa8] sm:$0xff]  ;;  %v44_v37 = vld [vmem:[%s3129_s2 + $0xb8] sm:$0xff]  ;;  %v2501_v38 = vpack.c.bf16 %v56_v32, %v55_v29  ;;  %v57_v39 = vld [vmem:[%s3130_s3 + $0x20] sm:$0xff]  ;;  %v2511_v41 = vpack.c.bf16 %v39_v35, %v37_v34 }
   0xa   :  { %1717 = vmatprep.subr.bf16.mxu0 %v2436_v16  ;;  %1742 = vmatpush1.bf16.msra.mxu1 %v2480_v31  ;;  %v58_v40 = vld [vmem:[%s3130_s3 + $0x28] sm:$0xff]  ;;  %v2514_v42 = vpack.c.bf16 %v44_v37, %v42_v36  ;;  %v41_v43 = vld [vmem:[%s3129_s2 + $0xa0] sm:$0xff]  ;;  %v43_v44 = vld [vmem:[%s3129_s2 + $0xb0] sm:$0xff] }
   0xb   :  { %1743 = vmatprep.subr.bf16.mxu1 %v2359_v8  ;;  %v46_v45 = vld [vmem:[%s3129_s2 + $0xc8] sm:$0xff]  ;;  %v48_v46 = vld [vmem:[%s3129_s2 + $0xd8] sm:$0xff]  ;;  %v2529_v47 = vpack.c.bf16 %v58_v40, %v57_v39 }
   0xd   :  { %1719 = vmatpush1.bf16.msra.mxu0 %v2451_v21 }
   0xe   :  { %1721 = vmatprep.subr.bf16.mxu0 %v2454_v22  ;;  %1745 = vmatpush1.bf16.msra.mxu1 %v2501_v38 }
  0x11   :  { %1723 = vmatpush1.bf16.msra.mxu0 %v2478_v30 }
  0x12   :  { %1725 = vmatprep.subr.bf16.mxu0 %v2486_v33 }
  0x13   :  { %10 = vsyncpa [#allocation3], 0  ;;  %1746 = vmatprep.subr.bf16.mxu1 %v2359_v8  ;;  %v59_v48 = vld [vmem:[%s3130_s3 + $0x30] sm:$0xff]  ;;  %v60_v49 = vld [vmem:[%s3130_s3 + $0x38] sm:$0xff]  ;;  %v2539_v50 = vpack.c.bf16 %v43_v44, %v41_v43  ;;  %v2542_v51 = vpack.c.bf16 %v48_v46, %v46_v45  ;;  %vm176_vm0 = vcmask 1043456   ;;  %vm172_vm1 = vcmask 424960  }
  0x14   :  { %v45_v52 = vld [vmem:[%s3129_s2 + $0xc0] sm:$0xff]  ;;  %v47_v53 = vld [vmem:[%s3129_s2 + $0xd0] sm:$0xff]  ;;  %v50_v54 = vld [vmem:[%s3129_s2 + $0xe8] sm:$0xff]  ;;  %1748 = vmatpush1.bf16.msra.mxu1 %v2529_v47  ;;  %v2557_v56 = vpack.c.bf16 %v60_v49, %v59_v48  ;;  %v77_v44 = vlaneseq  ;;  %vm251_vm3 = vcmask 1041408  }
  0x15   :  { %1727 = vmatpush1.bf16.msra.mxu0 %v2511_v41  ;;  %v52_v55 = vld [vmem:[%s3129_s2 + $0xf8] sm:$0xff]  ;;  %1749 = vmatprep.subr.bf16.mxu1 %v2359_v8  ;;  %v61_v57 = vld [vmem:[%s3130_s3 + $0x40] sm:$0xff]  ;;  %v62_v58 = vld [vmem:[%s3130_s3 + $0x48] sm:$0xff]  ;;  %v2567_v59 = vpack.c.bf16 %v47_v53, %v45_v52 }
  0x16   :  { %1729 = vmatprep.subr.bf16.mxu0 %v2514_v42  ;;  %v2570_v60 = vpack.c.bf16 %v52_v55, %v50_v54  ;;  %v49_v61 = vld [vmem:[%s3129_s2 + $0xe0] sm:$0xff]  ;;  %v51_v62 = vld [vmem:[%s3129_s2 + $0xf0] sm:$0xff]  ;;  %v2579_v63 = vpack.c.bf16 %v62_v58, %v61_v57  ;;  %v64_v1 = vld [vmem:[%s3130_s3 + $0x58] sm:$0xff]  ;;  %v2707_v45 = vand.u32 127, %v77_v44 }
  0x17   :  { %v63_v0 = vld [vmem:[%s3130_s3 + $0x50] sm:$0xff]  ;;  %v2589_v2 = vpack.c.bf16 %v51_v62, %v49_v61  ;;  %v65_v5 = vld [vmem:[%s3130_s3 + $0x60] sm:$0xff]  ;;  %v66_v6 = vld [vmem:[%s3130_s3 + $0x68] sm:$0xff] }
  0x18   :  { %1751 = vmatpush1.bf16.msra.mxu1 %v2557_v56  ;;  %v2593_v4 = vpack.c.bf16 %v64_v1, %v63_v0  ;;  %v80_v11 = vld [vmem:[%s3127_s0] sm:$0x3]  ;;  %v2608_v12 = vpack.c.bf16 %v66_v6, %v65_v5  ;;  %v67_v13 = vld [vmem:[%s3130_s3 + $0x70] sm:$0xff]  ;;  %v68_v14 = vld [vmem:[%s3130_s3 + $0x78] sm:$0xff]  ;;  %vm79_vm2 = vcmp.lt.s32.totalorder %v2707_v45, 3 }
  0x19   :  { %1731 = vmatpush1.bf16.msra.mxu0 %v2539_v50  ;;  %1752 = vmatprep.subr.bf16.mxu1 %v2359_v8  ;;  %v2621_v17 = vpack.c.bf16 %v68_v14, %v67_v13  ;;  %v69_v18 = vld [vmem:[%s3130_s3 + $0x80] sm:$0xff]  ;;  %v70_v19 = vld [vmem:[%s3130_s3 + $0x88] sm:$0xff]  ;;  %v71_v23 = vld [vmem:[%s3130_s3 + $0x90] sm:$0xff] }
  0x1a   :  { %1733 = vmatprep.subr.bf16.mxu0 %v2542_v51  ;;  %v2633_v20 = vpack.c.bf16 %v70_v19, %v69_v18  ;;  %v72_v24 = vld [vmem:[%s3130_s3 + $0x98] sm:$0xff]  ;;  %v73_v26 = vld [vmem:[%s3130_s3 + $0xa0] sm:$0xff]  ;;  %v74_v27 = vld [vmem:[%s3130_s3 + $0xa8] sm:$0xff] }
  0x1b   :  { %v2645_v25 = vpack.c.bf16 %v72_v24, %v71_v23  ;;  %v2666_v28 = vpack.c.bf16 %v74_v27, %v73_v26  ;;  %v2673_v29 = vld [vmem:[%s3130_s3 + $0xb0] sm:$0xf]  ;;  %v1672_v32 = vld.sshfl [vmem:[%s3128_s1] sm:$0x33 pattern:$0x76325410] }
  0x1c   :  { %1754 = vmatpush1.bf16.msra.mxu1 %v2579_v63  ;;  %v90_v34 = vcombine.high %v1672_v32, %v1672_v32  ;;  %v2712_v46 = vld [vmem:[%s3131_s4] ss:$0 sm:$0xff]  ;;  %v1677_v57 = vld.sshfl [vmem:[%s3128_s1 + $0x4] sm:$0x33 pattern:$0x76325410] }
  0x1d   :  { %1735 = vmatpush1.bf16.msra.mxu0 %v2567_v59  ;;  %1755 = vmatprep.subr.bf16.mxu1 %v2359_v8  ;;  %v275_v58 = vcombine.high %v1677_v57, %v1677_v57  ;;  %v1681_v24 = vld.sshfl [vmem:[%s3128_s1 + $0x8] sm:$0x33 pattern:$0x76325410] }
  0x1e   :  { %1737 = vmatprep.subr.bf16.mxu0 %v2570_v60  ;;  %v449_v26 = vcombine.high %v1681_v24, %v1681_v24 }
  0x20   :  { %1757 = vmatpush1.bf16.msra.mxu1 %v2593_v4 }
  0x21   :  { %1739 = vmatpush1.bf16.msra.mxu0 %v2589_v2  ;;  %1758 = vmatprep.subr.bf16.mxu1 %v2359_v8 }
  0x22   :  { %1774 = vmatprep.subr.bf16.mxu0 %v2402_v3 }
  0x24   :  { %158 = vmatmul.mubr.f32.vlgmr.msra.gmra.mrb[0].mxu0 %v80_v11  ;;  %1760 = vmatpush1.bf16.msra.mxu1 %v2608_v12 }
  0x25   :  { %1776 = vmatpush1.bf16.msra.mxu0 %v2415_v9  ;;  %342 = vmatprep.mubr.f32.mxu0 %v2358_v7 }
  0x26   :  { %1778 = vmatprep.subr.bf16.mxu0 %v2417_v10  ;;  %1761 = vmatprep.subr.bf16.mxu1 %v2359_v8 }
  0x28   :  { %1763 = vmatpush1.bf16.msra.mxu1 %v2621_v17 }
  0x29   :  { %1780 = vmatpush1.bf16.msra.mxu0 %v2433_v15  ;;  %1764 = vmatprep.subr.bf16.mxu1 %v2359_v8 }
  0x2a   :  { %1782 = vmatprep.subr.bf16.mxu0 %v2436_v16 }
  0x2c   :  { %1766 = vmatpush1.bf16.msra.mxu1 %v2633_v20 }
  0x2d   :  { %1784 = vmatpush1.bf16.msra.mxu0 %v2451_v21  ;;  %1767 = vmatprep.subr.bf16.mxu1 %v2359_v8 }
  0x2e   :  { %1786 = vmatprep.subr.bf16.mxu0 %v2454_v22 }
  0x30   :  { %1769 = vmatpush1.bf16.msra.mxu1 %v2645_v25 }
  0x31   :  { %1788 = vmatpush1.bf16.msra.mxu0 %v2478_v30  ;;  %1770 = vmatprep.subr.bf16.mxu1 %v2359_v8 }
  0x32   :  { %1790 = vmatprep.subr.bf16.mxu0 %v2486_v33 }
  0x34   :  { %1772 = vmatpush1.bf16.msra.mxu1 %v2666_v28 }
  0x35   :  { %1792 = vmatpush1.bf16.msra.mxu0 %v2511_v41  ;;  %224 = vmatprep.subr.mxu1 %v2358_v7 }
  0x36   :  { %1794 = vmatprep.subr.bf16.mxu0 %v2514_v42 }
  0x38   :  { %1674 = vmatpush1.msk.msra.mxu1 %vm176_vm0, %v2673_v29 }
  0x39   :  { %1796 = vmatpush1.bf16.msra.mxu0 %v2539_v50  ;;  %1805 = vmatprep.subr.bf16.mxu1 %v2359_v8 }
  0x3a   :  { %1798 = vmatprep.subr.bf16.mxu0 %v2542_v51 }
  0x3d   :  { %1800 = vmatpush1.bf16.msra.mxu0 %v2567_v59 }
  0x3e   :  { %1802 = vmatprep.subr.bf16.mxu0 %v2570_v60 }
  0x41   :  { %1804 = vmatpush1.bf16.msra.mxu0 %v2589_v2 }
  0x42   :  { %1839 = vmatprep.subr.bf16.mxu0 %v2402_v3 }
  0xf7   :  { %v159_v35 = vpop.f32.mrb[0].mxu0 }
  0xf8   :  { %v160_v36 = vadd.f32 %v1672_v32, %v159_v35  ;;  %v161_v37 = vpop.f32.mrb[1].mxu0 }
  0xf9   :  { %v162_v39 = vadd.f32 %v161_v37, %v90_v34 }
  0xfa   :  { %v164_v43 = vmax.f32 %v160_v36, 0.0 }
  0xfb   :  { %v165_v40 = vmax.f32 %v162_v39, 0.0 }
  0xfd   :  { %1675 = vmatprep.mubr.msk.f32.mxu1 %vm172_vm1, %v165_v40 }
  0xfe   :  { %245 = vmatmul.mubr.f32.vlgmr.msra.gmra.mrb[0].mxu1 %v164_v43 }
  0xff   :  { %1807 = vmatpush1.bf16.msra.mxu1 %v2480_v31 }
 0x100   :  { %1808 = vmatprep.subr.bf16.mxu1 %v2359_v8 }
 0x103   :  { %1810 = vmatpush1.bf16.msra.mxu1 %v2501_v38 }
 0x104   :  { %1811 = vmatprep.subr.bf16.mxu1 %v2359_v8 }
 0x107   :  { %1813 = vmatpush1.bf16.msra.mxu1 %v2529_v47 }
 0x108   :  { %1814 = vmatprep.subr.bf16.mxu1 %v2359_v8 }
 0x10b   :  { %1816 = vmatpush1.bf16.msra.mxu1 %v2557_v56 }
 0x10c   :  { %1817 = vmatprep.subr.bf16.mxu1 %v2359_v8 }
 0x10f   :  { %1819 = vmatpush1.bf16.msra.mxu1 %v2579_v63 }
 0x110   :  { %1820 = vmatprep.subr.bf16.mxu1 %v2359_v8 }
 0x113   :  { %1822 = vmatpush1.bf16.msra.mxu1 %v2593_v4 }
 0x114   :  { %1823 = vmatprep.subr.bf16.mxu1 %v2359_v8 }
 0x117   :  { %1825 = vmatpush1.bf16.msra.mxu1 %v2608_v12 }
 0x118   :  { %1826 = vmatprep.subr.bf16.mxu1 %v2359_v8 }
 0x11b   :  { %1828 = vmatpush1.bf16.msra.mxu1 %v2621_v17 }
 0x11c   :  { %1829 = vmatprep.subr.bf16.mxu1 %v2359_v8 }
 0x11f   :  { %1831 = vmatpush1.bf16.msra.mxu1 %v2633_v20 }
 0x120   :  { %1832 = vmatprep.subr.bf16.mxu1 %v2359_v8 }
 0x123   :  { %1834 = vmatpush1.bf16.msra.mxu1 %v2645_v25 }
 0x124   :  { %1835 = vmatprep.subr.bf16.mxu1 %v2359_v8 }
 0x127   :  { %1837 = vmatpush1.bf16.msra.mxu1 %v2666_v28 }
 0x128   :  { %398 = vmatprep.subr.mxu1 %v2358_v7 }
 0x12b   :  { %1678 = vmatpush1.msk.msra.mxu1 %vm176_vm0, %v2673_v29 }
 0x12c   :  { %1870 = vmatprep.subr.bf16.mxu1 %v2359_v8 }
 0x1d1   :  { %v246_v48 = vpop.f32.mrb[0].mxu1 }
 0x1d2   :  { %v247_v49 = vadd.f32 %v2712_v46, %v246_v48  ;;  %v248_v52 = vpop.f32.mrb[1].mxu1 }
 0x1d3   :  { %v1685_v52 = vld.sshfl [vmem:[%s3128_s1 + $0xc] sm:$0x33 pattern:$0x76325410] }
 0x1d4   :  { %v264_v53 = vmax.f32 %v247_v49, 0.0  ;;  %v2718_v54 = vsel %vm79_vm2, %v247_v49, -1e+30 }
 0x1d5   :  { %v252_v55 = vsel %vm251_vm3, %v2718_v54, -inf }
 0x1d6   :  { %343 = vmatmul.mubr.f32.vlgmr.msra.gmra.mrb[2].mxu0 %v264_v53  ;;  %253 = vmax.xlane.f32.xlu0 %v252_v55  ;;  %v623_v53 = vcombine.high %v1685_v52, %v1685_v52 }
 0x1d7   :  { %1841 = vmatpush1.bf16.msra.mxu0 %v2415_v9  ;;  %516 = vmatprep.mubr.f32.mxu0 %v2358_v7 }
 0x1d8   :  { %1843 = vmatprep.subr.bf16.mxu0 %v2417_v10 }
 0x1db   :  { %1845 = vmatpush1.bf16.msra.mxu0 %v2433_v15 }
 0x1dc   :  { %1847 = vmatprep.subr.bf16.mxu0 %v2436_v16 }
 0x1df   :  { %1849 = vmatpush1.bf16.msra.mxu0 %v2451_v21 }
 0x1e0   :  { %1851 = vmatprep.subr.bf16.mxu0 %v2454_v22 }
 0x1e3   :  { %1853 = vmatpush1.bf16.msra.mxu0 %v2478_v30 }
 0x1e4   :  { %1855 = vmatprep.subr.bf16.mxu0 %v2486_v33 }
 0x1e7   :  { %1857 = vmatpush1.bf16.msra.mxu0 %v2511_v41 }
 0x1e8   :  { %1859 = vmatprep.subr.bf16.mxu0 %v2514_v42 }
 0x1eb   :  { %1861 = vmatpush1.bf16.msra.mxu0 %v2539_v50 }
 0x1ec   :  { %1863 = vmatprep.subr.bf16.mxu0 %v2542_v51 }
 0x1ef   :  { %1865 = vmatpush1.bf16.msra.mxu0 %v2567_v59 }
 0x1f0   :  { %1867 = vmatprep.subr.bf16.mxu0 %v2570_v60 }
 0x1f3   :  { %1869 = vmatpush1.bf16.msra.mxu0 %v2589_v2 }
 0x1f4   :  { %1904 = vmatprep.subr.bf16.mxu0 %v2402_v3 }
 0x2a9   :  { %v344_v61 = vpop.f32.mrb[2].mxu0 }
 0x2aa   :  { %v345_v62 = vadd.f32 %v1677_v57, %v344_v61  ;;  %v346_v0 = vpop.f32.mrb[3].mxu0 }
 0x2ab   :  { %v347_v1 = vadd.f32 %v346_v0, %v275_v58 }
 0x2ac   :  { %v349_v6 = vmax.f32 %v345_v62, 0.0 }
 0x2ad   :  { %v350_v5 = vmax.f32 %v347_v1, 0.0 }
 0x2af   :  { %1679 = vmatprep.mubr.msk.f32.mxu1 %vm172_vm1, %v350_v5 }
 0x2b0   :  { %419 = vmatmul.mubr.f32.vlgmr.msra.gmra.mrb[2].mxu1 %v349_v6 }
 0x2b1   :  { %1872 = vmatpush1.bf16.msra.mxu1 %v2480_v31 }
 0x2b2   :  { %1873 = vmatprep.subr.bf16.mxu1 %v2359_v8 }
 0x2b5   :  { %1875 = vmatpush1.bf16.msra.mxu1 %v2501_v38 }
 0x2b6   :  { %1876 = vmatprep.subr.bf16.mxu1 %v2359_v8 }
 0x2b9   :  { %1878 = vmatpush1.bf16.msra.mxu1 %v2529_v47 }
 0x2ba   :  { %1879 = vmatprep.subr.bf16.mxu1 %v2359_v8 }
 0x2bd   :  { %1881 = vmatpush1.bf16.msra.mxu1 %v2557_v56 }
 0x2be   :  { %1882 = vmatprep.subr.bf16.mxu1 %v2359_v8 }
 0x2c1   :  { %1884 = vmatpush1.bf16.msra.mxu1 %v2579_v63 }
 0x2c2   :  { %1885 = vmatprep.subr.bf16.mxu1 %v2359_v8 }
 0x2c5   :  { %1887 = vmatpush1.bf16.msra.mxu1 %v2593_v4 }
 0x2c6   :  { %1888 = vmatprep.subr.bf16.mxu1 %v2359_v8 }
 0x2c9   :  { %1890 = vmatpush1.bf16.msra.mxu1 %v2608_v12 }
 0x2ca   :  { %1891 = vmatprep.subr.bf16.mxu1 %v2359_v8 }
 0x2cd   :  { %1893 = vmatpush1.bf16.msra.mxu1 %v2621_v17 }
 0x2ce   :  { %1894 = vmatprep.subr.bf16.mxu1 %v2359_v8 }
 0x2d1   :  { %1896 = vmatpush1.bf16.msra.mxu1 %v2633_v20 }
 0x2d2   :  { %1897 = vmatprep.subr.bf16.mxu1 %v2359_v8 }
 0x2d5   :  { %1899 = vmatpush1.bf16.msra.mxu1 %v2645_v25 }
 0x2d6   :  { %1900 = vmatprep.subr.bf16.mxu1 %v2359_v8 }
 0x2d9   :  { %1902 = vmatpush1.bf16.msra.mxu1 %v2666_v28 }
 0x2da   :  { %572 = vmatprep.subr.mxu1 %v2358_v7 }
 0x2dd   :  { %1682 = vmatpush1.msk.msra.mxu1 %vm176_vm0, %v2673_v29 }
 0x2de   :  { %2000 = vmatprep.subr.bf16.mxu1 %v2359_v8 }
 0x383   :  { %v420_v11 = vpop.f32.mrb[2].mxu1 }
 0x384   :  { %v421_v13 = vadd.f32 %v2712_v46, %v420_v11  ;;  %v422_v14 = vpop.f32.mrb[3].mxu1 }
 0x386   :  { %v438_v18 = vmax.f32 %v421_v13, 0.0  ;;  %v2771_v19 = vsel %vm79_vm2, %v421_v13, -1e+30 }
 0x387   :  { %v425_v23 = vsel %vm251_vm3, %v2771_v19, -inf }
 0x388   :  { %517 = vmatmul.mubr.f32.vlgmr.msra.gmra.mrb[4].mxu0 %v438_v18  ;;  %426 = vmax.xlane.f32.xlu0 %v425_v23  ;;  %v1689_v18 = vld.sshfl [vmem:[%s3128_s1 + $0x10] sm:$0x33 pattern:$0x76325410] }
 0x389   :  { %1906 = vmatpush1.bf16.msra.mxu0 %v2415_v9  ;;  %690 = vmatprep.mubr.f32.mxu0 %v2358_v7  ;;  %v797_v23 = vcombine.high %v1689_v18, %v1689_v18 }
 0x38a   :  { %1908 = vmatprep.subr.bf16.mxu0 %v2417_v10 }
 0x38d   :  { %1910 = vmatpush1.bf16.msra.mxu0 %v2433_v15 }
 0x38e   :  { %1912 = vmatprep.subr.bf16.mxu0 %v2436_v16 }
 0x391   :  { %1914 = vmatpush1.bf16.msra.mxu0 %v2451_v21 }
 0x392   :  { %1916 = vmatprep.subr.bf16.mxu0 %v2454_v22 }
 0x395   :  { %1918 = vmatpush1.bf16.msra.mxu0 %v2478_v30 }
 0x396   :  { %1920 = vmatprep.subr.bf16.mxu0 %v2486_v33 }
 0x399   :  { %1922 = vmatpush1.bf16.msra.mxu0 %v2511_v41 }
 0x39a   :  { %1924 = vmatprep.subr.bf16.mxu0 %v2514_v42 }
 0x39d   :  { %1926 = vmatpush1.bf16.msra.mxu0 %v2539_v50 }
 0x39e   :  { %1928 = vmatprep.subr.bf16.mxu0 %v2542_v51 }
 0x3a1   :  { %1930 = vmatpush1.bf16.msra.mxu0 %v2567_v59 }
 0x3a2   :  { %1932 = vmatprep.subr.bf16.mxu0 %v2570_v60 }
 0x3a5   :  { %1934 = vmatpush1.bf16.msra.mxu0 %v2589_v2 }
 0x3a6   :  { %1935 = vmatprep.subr.bf16.mxu0 %v2359_v8 }
 0x45b   :  { %v518_v27 = vpop.f32.mrb[4].mxu0 }
 0x45c   :  { %v519_v32 = vadd.f32 %v1681_v24, %v518_v27  ;;  %v520_v34 = vpop.f32.mrb[5].mxu0 }
 0x45d   :  { %v521_v35 = vadd.f32 %v520_v34, %v449_v26 }
 0x45e   :  { %v523_v37 = vmax.f32 %v519_v32, 0.0 }
 0x45f   :  { %v524_v36 = vmax.f32 %v521_v35, 0.0 }
 0x461   :  { %1683 = vmatprep.mubr.msk.f32.mxu1 %vm172_vm1, %v524_v36 }
 0x462   :  { %593 = vmatmul.mubr.f32.vlgmr.msra.gmra.mrb[4].mxu1 %v523_v37 }
 0x463   :  { %2002 = vmatpush1.bf16.msra.mxu1 %v2480_v31 }
 0x464   :  { %2003 = vmatprep.subr.bf16.mxu1 %v2359_v8 }
 0x467   :  { %2005 = vmatpush1.bf16.msra.mxu1 %v2501_v38 }
 0x468   :  { %2006 = vmatprep.subr.bf16.mxu1 %v2359_v8 }
 0x46b   :  { %2008 = vmatpush1.bf16.msra.mxu1 %v2529_v47 }
 0x46c   :  { %2009 = vmatprep.subr.bf16.mxu1 %v2359_v8 }
 0x46f   :  { %2011 = vmatpush1.bf16.msra.mxu1 %v2557_v56 }
 0x470   :  { %2012 = vmatprep.subr.bf16.mxu1 %v2359_v8 }
 0x473   :  { %2014 = vmatpush1.bf16.msra.mxu1 %v2579_v63 }
 0x474   :  { %2015 = vmatprep.subr.bf16.mxu1 %v2359_v8 }
 0x477   :  { %2017 = vmatpush1.bf16.msra.mxu1 %v2593_v4 }
 0x478   :  { %2018 = vmatprep.subr.bf16.mxu1 %v2359_v8 }
 0x47b   :  { %2020 = vmatpush1.bf16.msra.mxu1 %v2608_v12 }
 0x47c   :  { %2021 = vmatprep.subr.bf16.mxu1 %v2359_v8 }
 0x47f   :  { %2023 = vmatpush1.bf16.msra.mxu1 %v2621_v17 }
 0x480   :  { %2024 = vmatprep.subr.bf16.mxu1 %v2359_v8 }
 0x483   :  { %2026 = vmatpush1.bf16.msra.mxu1 %v2633_v20 }
 0x484   :  { %2027 = vmatprep.subr.bf16.mxu1 %v2359_v8 }
 0x487   :  { %2029 = vmatpush1.bf16.msra.mxu1 %v2645_v25 }
 0x488   :  { %2030 = vmatprep.subr.bf16.mxu1 %v2359_v8 }
 0x48b   :  { %2032 = vmatpush1.bf16.msra.mxu1 %v2666_v28 }
 0x48c   :  { %920 = vmatprep.subr.mxu1 %v2358_v7 }
 0x48f   :  { %1690 = vmatpush1.msk.msra.mxu1 %vm176_vm0, %v2673_v29 }
 0x490   :  { %2099 = vmatprep.subr.bf16.mxu1 %v2402_v3 }
 0x535   :  { %v594_v39 = vpop.f32.mrb[4].mxu1 }
 0x536   :  { %v595_v40 = vadd.f32 %v2712_v46, %v594_v39  ;;  %v596_v43 = vpop.f32.mrb[5].mxu1 }
 0x538   :  { %v612_v44 = vmax.f32 %v595_v40, 0.0  ;;  %v2824_v48 = vsel %vm79_vm2, %v595_v40, -1e+30 }
 0x539   :  { %v599_v49 = vsel %vm251_vm3, %v2824_v48, -inf }
 0x53a   :  { %691 = vmatmul.mubr.f32.vlgmr.msra.gmra.mrb[6].mxu0 %v612_v44  ;;  %600 = vmax.xlane.f32.xlu1 %v599_v49  ;;  %v1693_v49 = vld.sshfl [vmem:[%s3128_s1 + $0x14] sm:$0x33 pattern:$0x76325410] }
 0x53b   :  { %1937 = vmatpush1.bf16.msra.mxu0 %v2480_v31 }
 0x53c   :  { %1938 = vmatprep.subr.bf16.mxu0 %v2359_v8 }
 0x53f   :  { %1940 = vmatpush1.bf16.msra.mxu0 %v2501_v38 }
 0x540   :  { %1941 = vmatprep.subr.bf16.mxu0 %v2359_v8 }
 0x543   :  { %1943 = vmatpush1.bf16.msra.mxu0 %v2529_v47 }
 0x544   :  { %1944 = vmatprep.subr.bf16.mxu0 %v2359_v8 }
 0x547   :  { %1946 = vmatpush1.bf16.msra.mxu0 %v2557_v56 }
 0x548   :  { %1947 = vmatprep.subr.bf16.mxu0 %v2359_v8 }
 0x54b   :  { %1949 = vmatpush1.bf16.msra.mxu0 %v2579_v63 }
 0x54c   :  { %1950 = vmatprep.subr.bf16.mxu0 %v2359_v8 }
 0x54f   :  { %1952 = vmatpush1.bf16.msra.mxu0 %v2593_v4 }
 0x550   :  { %1953 = vmatprep.subr.bf16.mxu0 %v2359_v8 }
 0x553   :  { %1955 = vmatpush1.bf16.msra.mxu0 %v2608_v12 }
 0x554   :  { %1956 = vmatprep.subr.bf16.mxu0 %v2359_v8 }
 0x557   :  { %1958 = vmatpush1.bf16.msra.mxu0 %v2621_v17 }
 0x558   :  { %1959 = vmatprep.subr.bf16.mxu0 %v2359_v8 }
 0x55b   :  { %1961 = vmatpush1.bf16.msra.mxu0 %v2633_v20 }
 0x55c   :  { %1962 = vmatprep.subr.bf16.mxu0 %v2359_v8 }
 0x55f   :  { %1964 = vmatpush1.bf16.msra.mxu0 %v2645_v25 }
 0x560   :  { %1965 = vmatprep.subr.bf16.mxu0 %v2359_v8 }
 0x563   :  { %1967 = vmatpush1.bf16.msra.mxu0 %v2666_v28 }
 0x564   :  { %746 = vmatprep.subr.mxu0 %v2358_v7 }
 0x567   :  { %1686 = vmatpush1.msk.msra.mxu0 %vm176_vm0, %v2673_v29 }
 0x568   :  { %1969 = vmatprep.subr.bf16.mxu0 %v2402_v3 }
 0x60d   :  { %v692_v55 = vpop.f32.mrb[6].mxu0 }
 0x60e   :  { %v693_v57 = vadd.f32 %v1685_v52, %v692_v55  ;;  %v694_v58 = vpop.f32.mrb[7].mxu0  ;;  %v971_v52 = vcombine.high %v1693_v49, %v1693_v49 }
 0x60f   :  { %v695_v61 = vadd.f32 %v694_v58, %v623_v53 }
 0x610   :  { %v697_v0 = vmax.f32 %v693_v57, 0.0 }
 0x611   :  { %v698_v62 = vmax.f32 %v695_v61, 0.0 }
 0x613   :  { %1687 = vmatprep.mubr.msk.f32.mxu0 %vm172_vm1, %v698_v62 }
 0x614   :  { %767 = vmatmul.mubr.f32.vlgmr.msra.gmra.mrb[8].mxu0 %v697_v0 }
 0x615   :  { %1971 = vmatpush1.bf16.msra.mxu0 %v2415_v9  ;;  %864 = vmatprep.mubr.f32.mxu0 %v2358_v7 }
 0x616   :  { %1973 = vmatprep.subr.bf16.mxu0 %v2417_v10 }
 0x619   :  { %1975 = vmatpush1.bf16.msra.mxu0 %v2433_v15 }
 0x61a   :  { %1977 = vmatprep.subr.bf16.mxu0 %v2436_v16 }
 0x61d   :  { %1979 = vmatpush1.bf16.msra.mxu0 %v2451_v21 }
 0x61e   :  { %1981 = vmatprep.subr.bf16.mxu0 %v2454_v22 }
 0x621   :  { %1983 = vmatpush1.bf16.msra.mxu0 %v2478_v30 }
 0x622   :  { %1985 = vmatprep.subr.bf16.mxu0 %v2486_v33 }
 0x625   :  { %1987 = vmatpush1.bf16.msra.mxu0 %v2511_v41 }
 0x626   :  { %1989 = vmatprep.subr.bf16.mxu0 %v2514_v42 }
 0x629   :  { %1991 = vmatpush1.bf16.msra.mxu0 %v2539_v50 }
 0x62a   :  { %1993 = vmatprep.subr.bf16.mxu0 %v2542_v51 }
 0x62d   :  { %1995 = vmatpush1.bf16.msra.mxu0 %v2567_v59 }
 0x62e   :  { %1997 = vmatprep.subr.bf16.mxu0 %v2570_v60 }
 0x631   :  { %1999 = vmatpush1.bf16.msra.mxu0 %v2589_v2 }
 0x632   :  { %2034 = vmatprep.subr.bf16.mxu0 %v2402_v3 }
 0x6e7   :  { %v768_v1 = vpop.f32.mrb[8].mxu0 }
 0x6e8   :  { %v769_v5 = vadd.f32 %v2712_v46, %v768_v1  ;;  %v770_v6 = vpop.f32.mrb[9].mxu0 }
 0x6ea   :  { %v786_v11 = vmax.f32 %v769_v5, 0.0  ;;  %v2877_v13 = vsel %vm79_vm2, %v769_v5, -1e+30 }
 0x6eb   :  { %v773_v14 = vsel %vm251_vm3, %v2877_v13, -inf }
 0x6ec   :  { %865 = vmatmul.mubr.f32.vlgmr.msra.gmra.mrb[10].mxu0 %v786_v11  ;;  %774 = vmax.xlane.f32.xlu1 %v773_v14 }
 0x6ed   :  { %2036 = vmatpush1.bf16.msra.mxu0 %v2415_v9  ;;  %1038 = vmatprep.mubr.f32.mxu0 %v2358_v7 }
 0x6ee   :  { %2038 = vmatprep.subr.bf16.mxu0 %v2417_v10 }
 0x6f1   :  { %2040 = vmatpush1.bf16.msra.mxu0 %v2433_v15 }
 0x6f2   :  { %2042 = vmatprep.subr.bf16.mxu0 %v2436_v16 }
 0x6f5   :  { %2044 = vmatpush1.bf16.msra.mxu0 %v2451_v21 }
 0x6f6   :  { %2046 = vmatprep.subr.bf16.mxu0 %v2454_v22 }
 0x6f9   :  { %2048 = vmatpush1.bf16.msra.mxu0 %v2478_v30 }
 0x6fa   :  { %2050 = vmatprep.subr.bf16.mxu0 %v2486_v33 }
 0x6fd   :  { %2052 = vmatpush1.bf16.msra.mxu0 %v2511_v41 }
 0x6fe   :  { %2054 = vmatprep.subr.bf16.mxu0 %v2514_v42 }
 0x701   :  { %2056 = vmatpush1.bf16.msra.mxu0 %v2539_v50 }
 0x702   :  { %2058 = vmatprep.subr.bf16.mxu0 %v2542_v51 }
 0x705   :  { %2060 = vmatpush1.bf16.msra.mxu0 %v2567_v59 }
 0x706   :  { %2062 = vmatprep.subr.bf16.mxu0 %v2570_v60 }
 0x709   :  { %2064 = vmatpush1.bf16.msra.mxu0 %v2589_v2 }
 0x70a   :  { %2065 = vmatprep.subr.bf16.mxu0 %v2359_v8 }
 0x7bf   :  { %v866_v24 = vpop.f32.mrb[10].mxu0 }
 0x7c0   :  { %v867_v26 = vadd.f32 %v1689_v18, %v866_v24  ;;  %v868_v27 = vpop.f32.mrb[11].mxu0  ;;  %v1697_v18 = vld.sshfl [vmem:[%s3128_s1 + $0x18] sm:$0x33 pattern:$0x76325410] }
 0x7c1   :  { %v869_v32 = vadd.f32 %v868_v27, %v797_v23  ;;  %v1145_v23 = vcombine.high %v1697_v18, %v1697_v18 }
 0x7c2   :  { %v871_v35 = vmax.f32 %v867_v26, 0.0 }
 0x7c3   :  { %v872_v34 = vmax.f32 %v869_v32, 0.0 }
 0x7c5   :  { %1691 = vmatprep.mubr.msk.f32.mxu1 %vm172_vm1, %v872_v34 }
 0x7c6   :  { %941 = vmatmul.mubr.f32.vlgmr.msra.gmra.mrb[6].mxu1 %v871_v35 }
 0x7c7   :  { %2101 = vmatpush1.bf16.msra.mxu1 %v2415_v9  ;;  %1212 = vmatprep.mubr.f32.mxu1 %v2358_v7 }
 0x7c8   :  { %2103 = vmatprep.subr.bf16.mxu1 %v2417_v10 }
 0x7cb   :  { %2105 = vmatpush1.bf16.msra.mxu1 %v2433_v15 }
 0x7cc   :  { %2107 = vmatprep.subr.bf16.mxu1 %v2436_v16 }
 0x7cf   :  { %2109 = vmatpush1.bf16.msra.mxu1 %v2451_v21 }
 0x7d0   :  { %2111 = vmatprep.subr.bf16.mxu1 %v2454_v22 }
 0x7d3   :  { %2113 = vmatpush1.bf16.msra.mxu1 %v2478_v30 }
 0x7d4   :  { %2115 = vmatprep.subr.bf16.mxu1 %v2486_v33 }
 0x7d7   :  { %2117 = vmatpush1.bf16.msra.mxu1 %v2511_v41 }
 0x7d8   :  { %2119 = vmatprep.subr.bf16.mxu1 %v2514_v42 }
 0x7db   :  { %2121 = vmatpush1.bf16.msra.mxu1 %v2539_v50 }
 0x7dc   :  { %2123 = vmatprep.subr.bf16.mxu1 %v2542_v51 }
 0x7df   :  { %2125 = vmatpush1.bf16.msra.mxu1 %v2567_v59 }
 0x7e0   :  { %2127 = vmatprep.subr.bf16.mxu1 %v2570_v60 }
 0x7e3   :  { %2129 = vmatpush1.bf16.msra.mxu1 %v2589_v2 }
 0x7e4   :  { %2130 = vmatprep.subr.bf16.mxu1 %v2359_v8 }
 0x899   :  { %v942_v36 = vpop.f32.mrb[6].mxu1 }
 0x89a   :  { %v943_v37 = vadd.f32 %v2712_v46, %v942_v36  ;;  %v944_v39 = vpop.f32.mrb[7].mxu1 }
 0x89c   :  { %v960_v40 = vmax.f32 %v943_v37, 0.0  ;;  %v2922_v43 = vsel %vm79_vm2, %v943_v37, -1e+30  ;;  %v601_v37 = vpop.xlane.xlu1 %600 }
 0x89d   :  { %v947_v44 = vsel %vm251_vm3, %v2922_v43, -inf }
 0x89e   :  { %1039 = vmatmul.mubr.f32.vlgmr.msra.gmra.mrb[12].mxu0 %v960_v40  ;;  %948 = vmax.xlane.f32.xlu0 %v947_v44  ;;  %v602_v40 = vsub.f32 %v2824_v48, %v601_v37 }
 0x89f   :  { %2067 = vmatpush1.bf16.msra.mxu0 %v2480_v31 }
 0x8a0   :  { %2068 = vmatprep.subr.bf16.mxu0 %v2359_v8 }
 0x8a3   :  { %2070 = vmatpush1.bf16.msra.mxu0 %v2501_v38 }
 0x8a4   :  { %2071 = vmatprep.subr.bf16.mxu0 %v2359_v8 }
 0x8a7   :  { %2073 = vmatpush1.bf16.msra.mxu0 %v2529_v47 }
 0x8a8   :  { %2074 = vmatprep.subr.bf16.mxu0 %v2359_v8 }
 0x8ab   :  { %2076 = vmatpush1.bf16.msra.mxu0 %v2557_v56 }
 0x8ac   :  { %2077 = vmatprep.subr.bf16.mxu0 %v2359_v8 }
 0x8af   :  { %2079 = vmatpush1.bf16.msra.mxu0 %v2579_v63 }
 0x8b0   :  { %2080 = vmatprep.subr.bf16.mxu0 %v2359_v8 }
 0x8b3   :  { %2082 = vmatpush1.bf16.msra.mxu0 %v2593_v4 }
 0x8b4   :  { %2083 = vmatprep.subr.bf16.mxu0 %v2359_v8 }
 0x8b7   :  { %2085 = vmatpush1.bf16.msra.mxu0 %v2608_v12 }
 0x8b8   :  { %2086 = vmatprep.subr.bf16.mxu0 %v2359_v8 }
 0x8bb   :  { %2088 = vmatpush1.bf16.msra.mxu0 %v2621_v17 }
 0x8bc   :  { %2089 = vmatprep.subr.bf16.mxu0 %v2359_v8 }
 0x8bf   :  { %2091 = vmatpush1.bf16.msra.mxu0 %v2633_v20 }
 0x8c0   :  { %2092 = vmatprep.subr.bf16.mxu0 %v2359_v8 }
 0x8c3   :  { %2094 = vmatpush1.bf16.msra.mxu0 %v2645_v25 }
 0x8c4   :  { %2095 = vmatprep.subr.bf16.mxu0 %v2359_v8 }
 0x8c7   :  { %2097 = vmatpush1.bf16.msra.mxu0 %v2666_v28 }
 0x8c8   :  { %1094 = vmatprep.subr.mxu0 %v2358_v7 }
 0x8cb   :  { %1694 = vmatpush1.msk.msra.mxu0 %vm176_vm0, %v2673_v29 }
 0x8cc   :  { %2164 = vmatprep.subr.bf16.mxu0 %v2402_v3 }
 0x971   :  { %v1040_v53 = vpop.f32.mrb[12].mxu0 }
 0x972   :  { %v1041_v55 = vadd.f32 %v1693_v49, %v1040_v53  ;;  %v1042_v57 = vpop.f32.mrb[13].mxu0  ;;  %v603_v49 = vmul.f32 1.442695, %v602_v40 }
 0x973   :  { %v1043_v58 = vadd.f32 %v1042_v57, %v971_v52 }
 0x974   :  { %v1045_v62 = vmax.f32 %v1041_v55, 0.0 }
 0x975   :  { %v1046_v61 = vmax.f32 %v1043_v58, 0.0 }
 0x977   :  { %1695 = vmatprep.mubr.msk.f32.mxu0 %vm172_vm1, %v1046_v61 }
 0x978   :  { %1115 = vmatmul.mubr.f32.vlgmr.msra.gmra.mrb[14].mxu0 %v1045_v62 }
 0x979   :  { %2166 = vmatpush1.bf16.msra.mxu0 %v2415_v9  ;;  %1386 = vmatprep.mubr.f32.mxu0 %v2358_v7 }
 0x97a   :  { %2168 = vmatprep.subr.bf16.mxu0 %v2417_v10 }
 0x97d   :  { %2170 = vmatpush1.bf16.msra.mxu0 %v2433_v15 }
 0x97e   :  { %2172 = vmatprep.subr.bf16.mxu0 %v2436_v16 }
 0x981   :  { %2174 = vmatpush1.bf16.msra.mxu0 %v2451_v21 }
 0x982   :  { %2176 = vmatprep.subr.bf16.mxu0 %v2454_v22 }
 0x985   :  { %2178 = vmatpush1.bf16.msra.mxu0 %v2478_v30 }
 0x986   :  { %2180 = vmatprep.subr.bf16.mxu0 %v2486_v33 }
 0x989   :  { %2182 = vmatpush1.bf16.msra.mxu0 %v2511_v41 }
 0x98a   :  { %2184 = vmatprep.subr.bf16.mxu0 %v2514_v42 }
 0x98d   :  { %2186 = vmatpush1.bf16.msra.mxu0 %v2539_v50 }
 0x98e   :  { %2188 = vmatprep.subr.bf16.mxu0 %v2542_v51 }
 0x991   :  { %2190 = vmatpush1.bf16.msra.mxu0 %v2567_v59 }
 0x992   :  { %2192 = vmatprep.subr.bf16.mxu0 %v2570_v60 }
 0x995   :  { %2194 = vmatpush1.bf16.msra.mxu0 %v2589_v2 }
 0x996   :  { %2195 = vmatprep.subr.bf16.mxu0 %v2359_v8 }
 0xa4b   :  { %v1116_v0 = vpop.f32.mrb[14].mxu0 }
 0xa4c   :  { %v1117_v1 = vadd.f32 %v2712_v46, %v1116_v0  ;;  %v1118_v5 = vpop.f32.mrb[15].mxu0 }
 0xa4e   :  { %v1134_v6 = vmax.f32 %v1117_v1, 0.0  ;;  %v2975_v11 = vsel %vm79_vm2, %v1117_v1, -1e+30 }
 0xa4f   :  { %v1121_v14 = vsel %vm251_vm3, %v2975_v11, -inf }
 0xa50   :  { %1213 = vmatmul.mubr.f32.vlgmr.msra.gmra.mrb[8].mxu1 %v1134_v6  ;;  %1122 = vmax.xlane.f32.xlu1 %v1121_v14 }
 0xa51   :  { %2132 = vmatpush1.bf16.msra.mxu1 %v2480_v31 }
 0xa52   :  { %2133 = vmatprep.subr.bf16.mxu1 %v2359_v8 }
 0xa55   :  { %2135 = vmatpush1.bf16.msra.mxu1 %v2501_v38 }
 0xa56   :  { %2136 = vmatprep.subr.bf16.mxu1 %v2359_v8 }
 0xa59   :  { %2138 = vmatpush1.bf16.msra.mxu1 %v2529_v47 }
 0xa5a   :  { %2139 = vmatprep.subr.bf16.mxu1 %v2359_v8 }
 0xa5d   :  { %2141 = vmatpush1.bf16.msra.mxu1 %v2557_v56 }
 0xa5e   :  { %2142 = vmatprep.subr.bf16.mxu1 %v2359_v8 }
 0xa61   :  { %2144 = vmatpush1.bf16.msra.mxu1 %v2579_v63 }
 0xa62   :  { %2145 = vmatprep.subr.bf16.mxu1 %v2359_v8 }
 0xa65   :  { %2147 = vmatpush1.bf16.msra.mxu1 %v2593_v4 }
 0xa66   :  { %2148 = vmatprep.subr.bf16.mxu1 %v2359_v8 }
 0xa69   :  { %2150 = vmatpush1.bf16.msra.mxu1 %v2608_v12 }
 0xa6a   :  { %2151 = vmatprep.subr.bf16.mxu1 %v2359_v8 }
 0xa6d   :  { %2153 = vmatpush1.bf16.msra.mxu1 %v2621_v17 }
 0xa6e   :  { %2154 = vmatprep.subr.bf16.mxu1 %v2359_v8 }
 0xa71   :  { %2156 = vmatpush1.bf16.msra.mxu1 %v2633_v20 }
 0xa72   :  { %2157 = vmatprep.subr.bf16.mxu1 %v2359_v8 }
 0xa75   :  { %2159 = vmatpush1.bf16.msra.mxu1 %v2645_v25 }
 0xa76   :  { %2160 = vmatprep.subr.bf16.mxu1 %v2359_v8 }
 0xa79   :  { %2162 = vmatpush1.bf16.msra.mxu1 %v2666_v28 }
 0xa7a   :  { %1268 = vmatprep.subr.mxu1 %v2358_v7 }
 0xa7d   :  { %1698 = vmatpush1.msk.msra.mxu1 %vm176_vm0, %v2673_v29 }
 0xa7e   :  { %2229 = vmatprep.subr.bf16.mxu1 %v2402_v3 }
 0xb23   :  { %v1214_v24 = vpop.f32.mrb[8].mxu1 }
 0xb24   :  { %v1215_v26 = vadd.f32 %v1697_v18, %v1214_v24  ;;  %v1216_v27 = vpop.f32.mrb[9].mxu1 }
 0xb25   :  { %v1217_v32 = vadd.f32 %v1216_v27, %v1145_v23 }
 0xb26   :  { %v1219_v35 = vmax.f32 %v1215_v26, 0.0 }
 0xb27   :  { %v1220_v34 = vmax.f32 %v1217_v32, 0.0  ;;  %v1705_v32 = vld.sshfl [vmem:[%s3128_s1 + $0x20] sm:$0x33 pattern:$0x76325410] }
 0xb29   :  { %1699 = vmatprep.mubr.msk.f32.mxu1 %vm172_vm1, %v1220_v34  ;;  %v1493_v34 = vcombine.high %v1705_v32, %v1705_v32 }
 0xb2a   :  { %1289 = vmatmul.mubr.f32.vlgmr.msra.gmra.mrb[10].mxu1 %v1219_v35 }
 0xb2b   :  { %2231 = vmatpush1.bf16.msra.mxu1 %v2415_v9  ;;  %1560 = vmatprep.mubr.f32.mxu1 %v2358_v7 }
 0xb2c   :  { %2233 = vmatprep.subr.bf16.mxu1 %v2417_v10 }
 0xb2f   :  { %2235 = vmatpush1.bf16.msra.mxu1 %v2433_v15 }
 0xb30   :  { %2237 = vmatprep.subr.bf16.mxu1 %v2436_v16 }
 0xb33   :  { %2239 = vmatpush1.bf16.msra.mxu1 %v2451_v21 }
 0xb34   :  { %2241 = vmatprep.subr.bf16.mxu1 %v2454_v22  ;;  %v1701_v22 = vld.sshfl [vmem:[%s3128_s1 + $0x1c] sm:$0x33 pattern:$0x76325410]  ;;  %s2360_s1 = smov [#allocation2]  }
 0xb35   :  { %s1661_s19 = sshll.u32 %s2360_s1, 4  ;;  %s1662_s19 = int_to_ptr.vmem [resolvable:$true] %s1661_s19 }
 0xb36   :  { %s2334_s20 = scalar_lea.vmem %s1662_s19, 288  ;;  %p2339_p1 = scmp.lt.s32.totalorder %s1662_s19, %s1662_s19 }
 0xb37   :  { %2243 = vmatpush1.bf16.msra.mxu1 %v2478_v30  ;;  %v1319_v30 = vcombine.high %v1701_v22, %v1701_v22  ;;  %p2335_p0 = scmp.ne.s32.totalorder %s1662_s19, %s2334_s20  ;;  %p2340_p2 = scmp.lt.s32.totalorder %s2334_s20, %s2334_s20 }
 0xb38   :  { %2245 = vmatprep.subr.bf16.mxu1 %v2486_v33 }
 0xb39   :  { %p2341_p3 = por %p2340_p2, %p2339_p1 }
 0xb3b   :  { %2247 = vmatpush1.bf16.msra.mxu1 %v2511_v41  ;;  %p2342_p4 = pnand %p2341_p3, %p2335_p0 }
 0xb3c   :  { %2249 = vmatprep.subr.bf16.mxu1 %v2514_v42 }
 0xb3f   :  { %2251 = vmatpush1.bf16.msra.mxu1 %v2539_v50 }
 0xb40   :  { %2253 = vmatprep.subr.bf16.mxu1 %v2542_v51 }
 0xb43   :  { %2255 = vmatpush1.bf16.msra.mxu1 %v2567_v59 }
 0xb44   :  { %2257 = vmatprep.subr.bf16.mxu1 %v2570_v60  ;;  %v254_v60 = vpop.xlane.xlu0 %253 }
 0xb47   :  { %2259 = vmatpush1.bf16.msra.mxu1 %v2589_v2  ;;  %v255_v2 = vsub.f32 %v2718_v54, %v254_v60 }
 0xb48   :  { %2260 = vmatprep.subr.bf16.mxu1 %v2359_v8  ;;  %v3058_v36 = vpop.xlane.xlu0 %426 }
 0xb49   :  { %v256_v39 = vmul.f32 1.442695, %v255_v2 }
 0xb4b   :  { %2298 = vpow2.f32 %v256_v39 }
 0xb4c   :  { %v949_v44 = vpop.xlane.xlu0 %948  ;;  %2300 = vpow2.f32 %v603_v49 }
 0xb4d   :  { %v950_v52 = vsub.f32 %v2922_v43, %v949_v44 }
 0xb4f   :  { %v951_v55 = vmul.f32 1.442695, %v950_v52 }
 0xb51   :  { %2302 = vpow2.f32 %v951_v55 }
 0xb55   :  { %v2299_v5 = vpop.eup %2298 }
 0xb56   :  { %v258_v43 = vsel %vm251_vm3, %v2299_v5, 0.0  ;;  %v2301_v6 = vpop.eup %2300 }
 0xb57   :  { %v605_v14 = vsel %vm251_vm3, %v2301_v6, 0.0 }
 0xb5b   :  { %v2303_v18 = vpop.eup %2302 }
 0xbfd   :  { %v1290_v3 = vpop.f32.mrb[10].mxu1 }
 0xbfe   :  { %v1291_v9 = vadd.f32 %v2712_v46, %v1290_v3  ;;  %v1292_v10 = vpop.f32.mrb[11].mxu1 }
 0xc00   :  { %v1308_v15 = vmax.f32 %v1291_v9, 0.0  ;;  %v1294_v16 = vsel %vm79_vm2, %v1291_v9, -1e+30 }
 0xc01   :  { %v1295_v21 = vsel %vm251_vm3, %v1294_v16, -inf }
 0xc02   :  { %1387 = vmatmul.mubr.f32.vlgmr.msra.gmra.mrb[16].mxu0 %v1308_v15  ;;  %1296 = vmax.xlane.f32.xlu0 %v1295_v21  ;;  %v428_v21 = vsub.f32 %v2771_v19, %v3058_v36 }
 0xc03   :  { %2197 = vmatpush1.bf16.msra.mxu0 %v2480_v31 }
 0xc04   :  { %2198 = vmatprep.subr.bf16.mxu0 %v2359_v8 }
 0xc07   :  { %2200 = vmatpush1.bf16.msra.mxu0 %v2501_v38 }
 0xc08   :  { %2201 = vmatprep.subr.bf16.mxu0 %v2359_v8 }
 0xc0b   :  { %2203 = vmatpush1.bf16.msra.mxu0 %v2529_v47 }
 0xc0c   :  { %2204 = vmatprep.subr.bf16.mxu0 %v2359_v8 }
 0xc0f   :  { %2206 = vmatpush1.bf16.msra.mxu0 %v2557_v56 }
 0xc10   :  { %2207 = vmatprep.subr.bf16.mxu0 %v2359_v8 }
 0xc13   :  { %2209 = vmatpush1.bf16.msra.mxu0 %v2579_v63 }
 0xc14   :  { %2210 = vmatprep.subr.bf16.mxu0 %v2359_v8 }
 0xc17   :  { %2212 = vmatpush1.bf16.msra.mxu0 %v2593_v4 }
 0xc18   :  { %2213 = vmatprep.subr.bf16.mxu0 %v2359_v8 }
 0xc1b   :  { %2215 = vmatpush1.bf16.msra.mxu0 %v2608_v12 }
 0xc1c   :  { %2216 = vmatprep.subr.bf16.mxu0 %v2359_v8 }
 0xc1f   :  { %2218 = vmatpush1.bf16.msra.mxu0 %v2621_v17 }
 0xc20   :  { %2219 = vmatprep.subr.bf16.mxu0 %v2359_v8 }
 0xc23   :  { %2221 = vmatpush1.bf16.msra.mxu0 %v2633_v20 }
 0xc24   :  { %2222 = vmatprep.subr.bf16.mxu0 %v2359_v8 }
 0xc27   :  { %2224 = vmatpush1.bf16.msra.mxu0 %v2645_v25 }
 0xc28   :  { %2225 = vmatprep.subr.bf16.mxu0 %v2359_v8 }
 0xc2b   :  { %2227 = vmatpush1.bf16.msra.mxu0 %v2666_v28 }
 0xc2c   :  { %1442 = vmatprep.subr.mxu0 %v2358_v7 }
 0xc2f   :  { %1702 = vmatpush1.msk.msra.mxu0 %vm176_vm0, %v2673_v29 }
 0xc8f   :  { %v1297_v53 = vpop.xlane.xlu0 %1296 }
 0xc90   :  { %v1298_v57 = vsub.f32 %v1294_v16, %v1297_v53 }
 0xc92   :  { %v1299_v54 = vmul.f32 1.442695, %v1298_v57 }
 0xc94   :  { %2304 = vpow2.f32 %v1299_v54 }
 0xc9e   :  { %v2305_v23 = vpop.eup %2304 }
 0xcd5   :  { %v1388_v33 = vpop.f32.mrb[16].mxu0 }
 0xcd6   :  { %v1389_v41 = vadd.f32 %v1701_v22, %v1388_v33  ;;  %v1390_v42 = vpop.f32.mrb[17].mxu0  ;;  %v429_v22 = vmul.f32 1.442695, %v428_v21 }
 0xcd7   :  { %v1391_v50 = vadd.f32 %v1390_v42, %v1319_v30 }
 0xcd8   :  { %v1393_v59 = vmax.f32 %v1389_v41, 0.0 }
 0xcd9   :  { %v1394_v51 = vmax.f32 %v1391_v50, 0.0 }
 0xcdb   :  { %1703 = vmatprep.mubr.msk.f32.mxu0 %vm172_vm1, %v1394_v51 }
 0xcdc   :  { %1463 = vmatmul.mubr.f32.vlgmr.msra.gmra.mrb[18].mxu0 %v1393_v59 }
 0xdaf   :  { %v1464_v58 = vpop.f32.mrb[18].mxu0 }
 0xdb0   :  { %v1465_v61 = vadd.f32 %v2712_v46, %v1464_v58  ;;  %v1466_v62 = vpop.f32.mrb[19].mxu0 }
 0xdb2   :  { %v1482_v0 = vmax.f32 %v1465_v61, 0.0  ;;  %v3065_v1 = vsel %vm79_vm2, %v1465_v61, -1e+30 }
 0xdb3   :  { %v1469_v48 = vsel %vm251_vm3, %v3065_v1, -inf }
 0xdb4   :  { %1561 = vmatmul.mubr.f32.vlgmr.msra.gmra.mrb[12].mxu1 %v1482_v0  ;;  %1470 = vmax.xlane.f32.xlu1 %v1469_v48 }
 0xdb5   :  { %2262 = vmatpush1.bf16.msra.mxu1 %v2480_v31  ;;  %v953_v31 = vsel %vm251_vm3, %v2303_v18, 0.0 }
 0xdb6   :  { %2263 = vmatprep.subr.bf16.mxu1 %v2359_v8 }
 0xdb8   :  { %259 = vadd.xlane.f32.xlu1 %v258_v43 }
 0xdb9   :  { %2265 = vmatpush1.bf16.msra.mxu1 %v2501_v38  ;;  %v1301_v38 = vsel %vm251_vm3, %v2305_v23, 0.0 }
 0xdba   :  { %2266 = vmatprep.subr.bf16.mxu1 %v2359_v8 }
 0xdbc   :  { %606 = vadd.xlane.f32.xlu1 %v605_v14 }
 0xdbd   :  { %2268 = vmatpush1.bf16.msra.mxu1 %v2529_v47  ;;  %v775_v47 = vpop.xlane.xlu1 %774 }
 0xdbe   :  { %2269 = vmatprep.subr.bf16.mxu1 %v2359_v8  ;;  %v776_v30 = vsub.f32 %v2877_v13, %v775_v47 }
 0xdc0   :  { %954 = vadd.xlane.f32.xlu1 %v953_v31  ;;  %v777_v33 = vmul.f32 1.442695, %v776_v30 }
 0xdc1   :  { %2271 = vmatpush1.bf16.msra.mxu1 %v2557_v56  ;;  %v1123_v56 = vpop.xlane.xlu1 %1122 }
 0xdc2   :  { %2272 = vmatprep.subr.bf16.mxu1 %v2359_v8  ;;  %v1124_v41 = vsub.f32 %v2975_v11, %v1123_v56 }
 0xdc4   :  { %1302 = vadd.xlane.f32.xlu1 %v1301_v38  ;;  %v1125_v42 = vmul.f32 1.442695, %v1124_v41 }
 0xdc5   :  { %2274 = vmatpush1.bf16.msra.mxu1 %v2579_v63 }
 0xdc6   :  { %2275 = vmatprep.subr.bf16.mxu1 %v2359_v8 }
 0xdc9   :  { %2277 = vmatpush1.bf16.msra.mxu1 %v2593_v4 }
 0xdca   :  { %2278 = vmatprep.subr.bf16.mxu1 %v2359_v8 }
 0xdcd   :  { %2280 = vmatpush1.bf16.msra.mxu1 %v2608_v12 }
 0xdce   :  { %2281 = vmatprep.subr.bf16.mxu1 %v2359_v8 }
 0xdd1   :  { %2283 = vmatpush1.bf16.msra.mxu1 %v2621_v17 }
 0xdd2   :  { %2284 = vmatprep.subr.bf16.mxu1 %v2359_v8 }
 0xdd5   :  { %2286 = vmatpush1.bf16.msra.mxu1 %v2633_v20 }
 0xdd6   :  { %2287 = vmatprep.subr.bf16.mxu1 %v2359_v8 }
 0xdd9   :  { %2289 = vmatpush1.bf16.msra.mxu1 %v2645_v25 }
 0xdda   :  { %2290 = vmatprep.subr.bf16.mxu1 %v2359_v8 }
 0xddd   :  { %2292 = vmatpush1.bf16.msra.mxu1 %v2666_v28 }
 0xdde   :  { %1616 = vmatprep.subr.mxu1 %v2358_v7 }
 0xde1   :  { %1706 = vmatpush1.msk.msra.mxu1 %vm176_vm0, %v2673_v29 }
 0xe41   :  { %v1471_v63 = vpop.xlane.xlu1 %1470 }
 0xe42   :  { %v1472_v50 = vsub.f32 %v3065_v1, %v1471_v63 }
 0xe44   :  { %v1473_v2 = vmul.f32 1.442695, %v1472_v50 }
 0xe45   :  { %v260_v4 = vpop.xlane.xlu1 %259 }
 0xe46   :  { %2306 = vrcp.f32 %v260_v4 }
 0xe49   :  { %v607_v12 = vpop.xlane.xlu1 %606 }
 0xe4a   :  { %2308 = vrcp.f32 %v607_v12 }
 0xe4d   :  { %v955_v17 = vpop.xlane.xlu1 %954 }
 0xe4e   :  { %2310 = vrcp.f32 %v955_v17 }
 0xe50   :  { %v2307_v20 = vpop.eup %2306 }
 0xe51   :  { %v1303_v25 = vpop.xlane.xlu1 %1302  ;;  %v262_v24 = vmul.f32 %v2307_v20, %v2299_v5 }
 0xe52   :  { %2312 = vrcp.f32 %v1303_v25 }
 0xe53   :  { %263 = vst [vmem:[#allocation2] sm:$0x3] %v262_v24  ;;  %2314 = vpow2.f32 %v429_v22 }
 0xe54   :  { %v2309_v8 = vpop.eup %2308  ;;  %2316 = vpow2.f32 %v777_v33 }
 0xe55   :  { %v609_v28 = vmul.f32 %v2309_v8, %v2301_v6  ;;  %2318 = vpow2.f32 %v1125_v42 }
 0xe56   :  { %2320 = vpow2.f32 %v1473_v2 }
 0xe57   :  { %611 = vst [vmem:[#allocation2 + $0x4] sm:$0x3] %v609_v28 }
 0xe58   :  { %v2311_v7 = vpop.eup %2310 }
 0xe59   :  { %v957_v26 = vmul.f32 %v2311_v7, %v2303_v18 }
 0xe5b   :  { %959 = vst [vmem:[#allocation2 + $0x8] sm:$0x3] %v957_v26 }
 0xe5c   :  { %v2313_v29 = vpop.eup %2312 }
 0xe5d   :  { %v1305_v27 = vmul.f32 %v2313_v29, %v2305_v23  ;;  %v2315_v13 = vpop.eup %2314 }
 0xe5e   :  { %v431_v11 = vsel %vm251_vm3, %v2315_v13, 0.0  ;;  %v2317_v37 = vpop.eup %2316 }
 0xe5f   :  { %1307 = vst [vmem:[#allocation2 + $0xc] sm:$0x3] %v1305_v27  ;;  %v779_v39 = vsel %vm251_vm3, %v2317_v37, 0.0  ;;  %v2319_v40 = vpop.eup %2318 }
 0xe60   :  { %v2321_v44 = vpop.eup %2320 }
 0xe61   :  { %v1475_v45 = vsel %vm251_vm3, %v2321_v44, 0.0 }
 0xe87   :  { %v1562_v35 = vpop.f32.mrb[12].mxu1 }
 0xe88   :  { %v1563_v3 = vadd.f32 %v1705_v32, %v1562_v35  ;;  %v1564_v9 = vpop.f32.mrb[13].mxu1 }
 0xe89   :  { %v1565_v10 = vadd.f32 %v1564_v9, %v1493_v34 }
 0xe8a   :  { %v1567_v16 = vmax.f32 %v1563_v3, 0.0 }
 0xe8b   :  { %v1568_v15 = vmax.f32 %v1565_v10, 0.0 }
 0xe8d   :  { %1707 = vmatprep.mubr.msk.f32.mxu1 %vm172_vm1, %v1568_v15 }
 0xe8e   :  { %1637 = vmatmul.mubr.f32.vlgmr.msra.gmra.mrb[14].mxu1 %v1567_v16 }
 0xf61   :  { %v1638_v51 = vpop.f32.mrb[14].mxu1 }
 0xf62   :  { %v1639_v59 = vadd.f32 %v2712_v46, %v1638_v51  ;;  %v1640_v60 = vpop.f32.mrb[15].mxu1  ;;  %v1127_v46 = vsel %vm251_vm3, %v2319_v40, 0.0 }
 0xf64   :  { %v1642_v19 = vsel %vm79_vm2, %v1639_v59, -1e+30 }
 0xf65   :  { %v1643_v36 = vsel %vm251_vm3, %v1642_v19, -inf }
 0xf66   :  { %1644 = vmax.xlane.f32.xlu0 %v1643_v36 }
 0xf6a   :  { %432 = vadd.xlane.f32.xlu0 %v431_v11 }
 0xf6e   :  { %780 = vadd.xlane.f32.xlu0 %v779_v39 }
 0xf72   :  { %1128 = vadd.xlane.f32.xlu0 %v1127_v46 }
 0xf76   :  { %1476 = vadd.xlane.f32.xlu0 %v1475_v45 }
 0xff3   :  { %v1645_v49 = vpop.xlane.xlu0 %1644 }
 0xff4   :  { %v1646_v52 = vsub.f32 %v1642_v19, %v1645_v49 }
 0xff6   :  { %v1647_v53 = vmul.f32 1.442695, %v1646_v52 }
 0xff7   :  { %v433_v55 = vpop.xlane.xlu0 %432 }
 0xff8   :  { %2322 = vpow2.f32 %v1647_v53 }
 0xff9   :  { %2324 = vrcp.f32 %v433_v55 }
 0xffb   :  { %v781_v57 = vpop.xlane.xlu0 %780 }
 0xffc   :  { %2326 = vrcp.f32 %v781_v57 }
 0xfff   :  { %v1129_v58 = vpop.xlane.xlu0 %1128 }
0x1000   :  { %2328 = vrcp.f32 %v1129_v58 }
0x1002   :  { %v2323_v61 = vpop.eup %2322 }
0x1003   :  { %v2325_v62 = vpop.eup %2324  ;;  %v1477_v54 = vpop.xlane.xlu0 %1476  ;;  %v1649_v0 = vsel %vm251_vm3, %v2323_v61, 0.0 }
0x1004   :  { %v435_v1 = vmul.f32 %v2325_v62, %v2315_v13  ;;  %2330 = vrcp.f32 %v1477_v54  ;;  %1650 = vadd.xlane.f32.xlu1 %v1649_v0 }
0x1006   :  { %v2327_v48 = vpop.eup %2326  ;;  %437 = vst [vmem:[#allocation2 + $0x2] sm:$0x3] %v435_v1 }
0x1007   :  { %v783_v5 = vmul.f32 %v2327_v48, %v2317_v37 }
0x1009   :  { %785 = vst [vmem:[#allocation2 + $0x6] sm:$0x3] %v783_v5 }
0x100a   :  { %v2329_v43 = vpop.eup %2328 }
0x100b   :  { %v1131_v6 = vmul.f32 %v2329_v43, %v2319_v40 }
0x100d   :  { %1133 = vst [vmem:[#allocation2 + $0xa] sm:$0x3] %v1131_v6 }
0x100e   :  { %v2331_v14 = vpop.eup %2330 }
0x100f   :  { %v1479_v18 = vmul.f32 %v2331_v14, %v2321_v44 }
0x1011   :  { %1481 = vst [vmem:[#allocation2 + $0xe] sm:$0x3] %v1479_v18 }
0x1091   :  { %v1651_v31 = vpop.xlane.xlu1 %1650 }
0x1092   :  { %2332 = vrcp.f32 %v1651_v31 }
0x109c   :  { %v2333_v23 = vpop.eup %2332 }
0x109d   :  { %v1653_v38 = vmul.f32 %v2333_v23, %v2323_v61 }
0x109f   :  { %1655 = vst [vmem:[#allocation2 + $0x10] sm:$0x3] %v1653_v38 }
0x10a0   :  { %2345 = shalt.err (!%p2342_p4)
}
0x10a1   :  { %s2346_s23 = scalar_lea.hbm %s3132_s5, 288 }
0x10a2   :  { %p2347_p5 = scmp.ne.s32.totalorder %s3132_s5, %s2346_s23  ;;  %p2350_p6 = scmp.lt.u32.totalorder %s2346_s23, %s3132_s5 }
0x10a4   :  { %p2352_p7 = pnand %p2350_p6, %p2347_p5 }
0x10a6   :  { %2355 = shalt.err (!%p2352_p7)
}
0x10a7   :  { %s2361_s28 = smov 32   ;;  %s2362_s29 = smov 2  }
0x10a8   :  { %1667 = dma.vmem_to_hbm [thread:$0]  %s1662_s19, 288, %s3132_s5, [#allocation3], %s2361_s28, %s2361_s28, %s2362_s29  }
0x10a9   :  { %2356 = dma.done.wait [#allocation3], 288  }
0x10aa   :  { %2357 = vsyncadd [#allocation3], 4294967008 }
0x10ab   :  { %1671 = vsyncpa [#allocation3], 1 }

</bundles_post_ra>
